<compile_context>
chip_gen: v7x
topology: tpu7x:2x2x1
jax: 0.10.0
libtpu: 0.0.40
codegen_flags: <defaults>
</compile_context>

<pallas_src>
import functools

import jax
import jax.numpy as jnp
from jax import lax
from jax.experimental import pallas as pl
from jax.experimental.pallas import tpu as pltpu


C_PAD = 128                      # class axis padded to one full lane width
_XW_RESIDENT_BYTES = 8 * 2**20   # keep XW fully VMEM-resident up to this size


def _round_up(x, m):
    return (x + m - 1) // m * m


def _pick_tiles(n):
    """Return (TM, TK, n_pad). Large tiles for large graphs (amortize the ~0.35us
    per-grid-step overhead and make each A DMA big enough to reach HBM roofline),
    single-tile for small graphs. TM divides TK divides n_pad by construction."""
    n128 = _round_up(n, 128)
    if n128 <= 256:
        return n128, n128, n128
    if n128 <= 2048:
        n_pad = _round_up(n, 256)
        return 256, 256, n_pad
    n_pad = _round_up(n, 1024)
    # 512x1024 bf16 A double-buffered is ~2 MiB -> safe on every generation incl. v7x.
    return 512, 1024, n_pad


def _build_gcn_norm_adjacency_bf16_padded(edge_index, num_nodes, n_pad):
    """Dense D^{-1/2}(A+I)D^{-1/2} (PyG GCNConv default norm), emitted directly as a
    zero-padded bf16 (n_pad, n_pad) matrix (single dense materialization)."""
    src, dst = edge_index[0], edge_index[1]
    adj = jnp.zeros((num_nodes, num_nodes), jnp.float32)
    adj = adj.at[dst, src].add(1.0)                       # message src -> dst
    adj = adj + jnp.eye(num_nodes, dtype=jnp.float32)     # self loops
    deg = jnp.sum(adj, axis=1)
    dinv = jnp.where(deg > 0, lax.rsqrt(deg), 0.0)
    a_hat = (dinv[:, None] * adj * dinv[None, :]).astype(jnp.bfloat16)
    return jnp.zeros((n_pad, n_pad), jnp.bfloat16).at[:num_nodes, :num_nodes].set(a_hat)


def agg_ce_kernel(a_ref, xw_ref, b_ref, y_ref, emb_ref, nll_ref, *,
                  num_classes, tk, xw_resident):
    """Accumulate A_tile @ XW directly into the resident f32 emb output block; at the
    last reduction step add bias and fuse the cross-entropy epilogue.

    a_ref  : (TM, TK)            bf16 normalized-adjacency tile
    xw_ref : (n_pad, C_PAD) or (TK, C_PAD) bf16 precomputed hiddens @ W
    b_ref  : (1, C_PAD)          f32 bias (zero in padded class lanes)
    y_ref  : (TM, 1)             int32 labels (-1 marks padded rows)
    emb_ref: (TM, C_PAD)         f32 logits out (lane-dense, resident across k)
    nll_ref: (TM, 1)             f32 per-node negative log-likelihood out
    """
    k = pl.program_id(1)

    @pl.when(k == 0)
    def _():
        emb_ref[...] = jnp.zeros_like(emb_ref)

    if xw_resident:
        r0 = pl.multiple_of(k * tk, tk)
        xw_blk = xw_ref[pl.ds(r0, tk), :]
    else:
        xw_blk = xw_ref[...]

    emb_ref[...] += jnp.dot(a_ref[...], xw_blk, preferred_element_type=jnp.float32)

    @pl.when(k == pl.num_programs(1) - 1)
    def _():
        emb = emb_ref[...] + b_ref[...]                    # (TM, C_PAD) f32
        emb_ref[...] = emb

        # Cross-entropy in f32 (v5e has no bf16 VPU/EUP). Padded class lanes -> -1e30.
        col = lax.broadcasted_iota(jnp.int32, emb.shape, 1)
        logits = jnp.where(col < num_classes, emb, -1e30)
        m = jnp.max(logits, axis=-1, keepdims=True)
        lse = jnp.log(jnp.sum(jnp.exp(logits - m), axis=-1, keepdims=True)) + m
        y = y_ref[...]                                     # (TM, 1), -1 == padded row
        logp_y = jnp.sum(jnp.where(col == y, logits - lse, 0.0),
                         axis=-1, keepdims=True)
        nll_ref[...] = jnp.where(y >= 0, -logp_y, 0.0)


def gcn_domain_adaptation_forward(edge_index, hiddens, weight, bias, labels,
                                  num_classes):
    """GCNConv + domain-adaptation cross-entropy. Returns {'pred_da', 'loss'}."""
    n, h = hiddens.shape
    c = weight.shape[1]
    assert c == num_classes
    assert num_classes <= C_PAD, "C_PAD=128 is hard-coded; widen it for more classes"

    tm, tk, n_pad = _pick_tiles(n)

    # ---- wrapper-side padding / casting (layout plumbing only) -------------------
    a_bf = _build_gcn_norm_adjacency_bf16_padded(edge_index, n, n_pad)
    x_bf = jnp.zeros((n_pad, h), jnp.bfloat16).at[:n, :].set(
        hiddens.astype(jnp.bfloat16))
    w_bf = jnp.zeros((h, C_PAD), jnp.bfloat16).at[:, :c].set(
        weight.astype(jnp.bfloat16))
    b_pad = jnp.zeros((1, C_PAD), jnp.float32).at[0, :c].set(
        bias.astype(jnp.float32))
    y_pad = jnp.full((n_pad, 1), -1, jnp.int32).at[:n, 0].set(
        labels.astype(jnp.int32))

    # XW = hiddens @ W, computed once via plain XLA (N x h x C is negligible next to
    # the O(N^2) aggregation; a dedicated Pallas launch here was pure overhead).
    xw = jnp.dot(x_bf, w_bf,
                 preferred_element_type=jnp.float32).astype(jnp.bfloat16)

    # ---- fused kernel: tiled A_hat @ XW + bias, fused cross-entropy --------------
    xw_resident = n_pad * C_PAD * 2 <= _XW_RESIDENT_BYTES
    xw_spec = (pl.BlockSpec((n_pad, C_PAD), lambda i, k: (0, 0)) if xw_resident
               else pl.BlockSpec((tk, C_PAD), lambda i, k: (k, 0)))

    grid = (n_pad // tm, n_pad // tk)

    # VMEM budget: double-buffered A tile + (resident) XW + resident f32 logits block.
    vmem_est = (2 * tm * tk * 2
                + (n_pad * C_PAD * 2 if xw_resident else 2 * tk * C_PAD * 2)
                + 2 * tm * C_PAD * 4
                + 4 * tm * 4 + C_PAD * 4)
    # Cap at 48 MiB so the limit is valid on v7x (64 MiB physical) as well as v5e/v6e.
    vmem_limit = int(min(48 * 2**20, max(32 * 2**20, 2 * vmem_est)))

    cost = pl.CostEstimate(
        flops=2 * n_pad * n_pad * C_PAD,
        transcendentals=n_pad * C_PAD,
        bytes_accessed=(a_bf.size * 2 + xw.size * 2 + b_pad.size * 4
                        + y_pad.size * 4 + n_pad * C_PAD * 4 + n_pad * 4),
    )

    emb_pad, nll_pad = pl.pallas_call(
        functools.partial(agg_ce_kernel, num_classes=num_classes, tk=tk,
                          xw_resident=xw_resident),
        out_shape=(jax.ShapeDtypeStruct((n_pad, C_PAD), jnp.float32),
                   jax.ShapeDtypeStruct((n_pad, 1), jnp.float32)),
        grid_spec=pltpu.PrefetchScalarGridSpec(
            num_scalar_prefetch=0,
            grid=grid,
            in_specs=[
                pl.BlockSpec((tm, tk), lambda i, k: (i, k)),     # A_hat tile
                xw_spec,                                         # XW (VMEM-resident)
                pl.BlockSpec((1, C_PAD), lambda i, k: (0, 0)),   # bias (resident)
                pl.BlockSpec((tm, 1), lambda i, k: (i, 0)),      # labels
            ],
            out_specs=[
                pl.BlockSpec((tm, C_PAD), lambda i, k: (i, 0)),  # logits (lane-dense)
                pl.BlockSpec((tm, 1), lambda i, k: (i, 0)),      # per-node NLL
            ],
        ),
        compiler_params=pltpu.CompilerParams(
            dimension_semantics=("parallel", "arbitrary"),
            vmem_limit_bytes=vmem_limit),
        cost_estimate=cost,
    )(a_bf, xw, b_pad, y_pad)

    # Tiny scalar reduction (padded rows contribute exactly 0).
    loss = jnp.sum(nll_pad) / jnp.float32(n)
    return {"pred_da": emb_pad[:n, :num_classes], "loss": loss}


if __name__ == "__main__":
    key = jax.random.PRNGKey(0)
    N = 200       # number of graph nodes (not a tile multiple -> exercises padding path)
    H = 32        # params.hidden_c
    C = 8         # graph.no_cls
    E = 512       # directed random edges before symmetrization

    k_edge, k_x, k_w, k_y = jax.random.split(key, 4)

    ends = jax.random.randint(k_edge, (2, E), 0, N, dtype=jnp.int32)
    edge_index = jnp.concatenate([ends, ends[::-1]], axis=1)        # undirected

    hiddens = jax.random.normal(k_x, (N, H), jnp.float32)           # rev_grad == identity fwd
    lim = (6.0 / (H + C)) ** 0.5                                    # glorot-uniform
    weight = jax.random.uniform(k_w, (H, C), jnp.float32, -lim, lim)
    bias = jnp.zeros((C,), jnp.float32)
    y = jax.random.randint(k_y, (N,), 0, C, dtype=jnp.int32)

    out = gcn_domain_adaptation_forward(edge_index, hiddens, weight, bias, y, C)
    jax.block_until_ready(out)

    # Reference with the same bf16 rounding of the MXU operands (f32 accumulation).
    _, _, n_pad = _pick_tiles(N)
    a_bf_ref = _build_gcn_norm_adjacency_bf16_padded(edge_index, N, n_pad)
    a32 = a_bf_ref[:N, :N].astype(jnp.float32)
    x32 = hiddens.astype(jnp.bfloat16).astype(jnp.float32)
    w32 = weight.astype(jnp.bfloat16).astype(jnp.float32)
    xw_ref = jnp.dot(x32, w32).astype(jnp.bfloat16).astype(jnp.float32)
    emb_ref = jnp.dot(a32, xw_ref) + bias[None, :]
    logp_ref = jax.nn.log_softmax(emb_ref, axis=-1)
    loss_ref = -jnp.mean(logp_ref[jnp.arange(N), y])

    assert jnp.allclose(out["pred_da"], emb_ref, atol=2e-2, rtol=2e-2)
    assert jnp.allclose(out["loss"], loss_ref, atol=2e-2, rtol=2e-2)

    print("KERNEL_OK")
</pallas_src>

<mosaic_0001>
module attributes {stable_mosaic.version = 11 : i64} {
  func.func @agg_ce_kernel(%arg0: i32, %arg1: i32, %arg2: memref<256x256xbf16, #tpu.memory_space<vmem>>, %arg3: memref<256x128xbf16, #tpu.memory_space<vmem>>, %arg4: memref<1x128xf32, #tpu.memory_space<vmem>>, %arg5: memref<256x1xi32, #tpu.memory_space<vmem>>, %arg6: memref<256x128xf32, #tpu.memory_space<vmem>>, %arg7: memref<256x1xf32, #tpu.memory_space<vmem>>) attributes {dimension_semantics = [#tpu.dimension_semantics<parallel>, #tpu.dimension_semantics<arbitrary>], iteration_bounds = array<i64: 1, 1>, scalar_prefetch = 0 : i64, scratch_operands = 0 : i64, tpu.core_type = #tpu.core_type<tc>, window_params = [{transform_indices = @transform_0, window_bounds = array<i64: 256, 256>}, {pipeline_mode = #tpu.pipeline_mode<synchronous>, transform_indices = @transform_1, window_bounds = array<i64: 256, 128>}, {pipeline_mode = #tpu.pipeline_mode<synchronous>, transform_indices = @transform_2, window_bounds = array<i64: 1, 128>}, {transform_indices = @transform_3, window_bounds = array<i64: 256, 1>}, {transform_indices = @transform_4, window_bounds = array<i64: 256, 128>}, {transform_indices = @transform_5, window_bounds = array<i64: 256, 1>}]} {
    %c0_i32 = arith.constant 0 : i32
    %0 = arith.cmpi eq, %arg1, %c0_i32 : i32
    %1 = arith.extui %0 : i1 to i32
    %c0_i32_0 = arith.constant 0 : i32
    %2 = arith.cmpi ne, %1, %c0_i32_0 : i32
    scf.if %2 {
      %cst_9 = arith.constant 0.000000e+00 : f32
      %15 = vector.broadcast %cst_9 : f32 to vector<256x128xf32>
      %c0_10 = arith.constant 0 : index
      %c0_11 = arith.constant 0 : index
      %16 = vector.load %arg6[%c0_10, %c0_11] : memref<256x128xf32, #tpu.memory_space<vmem>>, vector<256x128xf32>
      tpu.vector_store %arg6[%c0_10, %c0_11], %15 {strides = array<i32>} : memref<256x128xf32, #tpu.memory_space<vmem>>, vector<256x128xf32>,
    } else {
    }
    %c256_i32 = arith.constant 256 : i32
    %3 = arith.muli %arg1, %c256_i32 : i32
    %4 = tpu.assume_multiple %3, 256 : i32
    %5 = arith.index_cast %4 : i32 to index
    %c0 = arith.constant 0 : index
    %6 = vector.load %arg3[%5, %c0] : memref<256x128xbf16, #tpu.memory_space<vmem>>, vector<256x128xbf16>
    %c0_1 = arith.constant 0 : index
    %c0_2 = arith.constant 0 : index
    %7 = vector.load %arg6[%c0_1, %c0_2] : memref<256x128xf32, #tpu.memory_space<vmem>>, vector<256x128xf32>
    %c0_3 = arith.constant 0 : index
    %c0_4 = arith.constant 0 : index
    %8 = vector.load %arg2[%c0_3, %c0_4] : memref<256x256xbf16, #tpu.memory_space<vmem>>, vector<256x256xbf16>
    %cst = arith.constant dense<0.000000e+00> : vector<256x128xf32>
    %9 = tpu.matmul %8, %6, %cst {dimension_numbers = #tpu.dot_dimension_numbers<[1], [0], [0], [1], [0, 0, 1, 1], [], []>} : vector<256x256xbf16>, vector<256x128xbf16>, vector<256x128xf32> -> vector<256x128xf32>
    %10 = arith.addf %7, %9 : vector<256x128xf32>
    %c0_5 = arith.constant 0 : index
    %c0_6 = arith.constant 0 : index
    %11 = vector.load %arg6[%c0_5, %c0_6] : memref<256x128xf32, #tpu.memory_space<vmem>>, vector<256x128xf32>
    tpu.vector_store %arg6[%c0_5, %c0_6], %10 {strides = array<i32>} : memref<256x128xf32, #tpu.memory_space<vmem>>, vector<256x128xf32>,
    %c0_i32_7 = arith.constant 0 : i32
    %12 = arith.cmpi eq, %arg1, %c0_i32_7 : i32
    %13 = arith.extui %12 : i1 to i32
    %c0_i32_8 = arith.constant 0 : i32
    %14 = arith.cmpi ne, %13, %c0_i32_8 : i32
    scf.if %14 {
      %c0_9 = arith.constant 0 : index
      %c0_10 = arith.constant 0 : index
      %15 = vector.load %arg6[%c0_9, %c0_10] : memref<256x128xf32, #tpu.memory_space<vmem>>, vector<256x128xf32>
      %c0_11 = arith.constant 0 : index
      %c0_12 = arith.constant 0 : index
      %16 = vector.load %arg4[%c0_11, %c0_12] : memref<1x128xf32, #tpu.memory_space<vmem>>, vector<1x128xf32>
      %17 = vector.broadcast %16 : vector<1x128xf32> to vector<256x128xf32>
      %18 = arith.addf %15, %17 : vector<256x128xf32>
      %c0_13 = arith.constant 0 : index
      %c0_14 = arith.constant 0 : index
      %19 = vector.load %arg6[%c0_13, %c0_14] : memref<256x128xf32, #tpu.memory_space<vmem>>, vector<256x128xf32>
      tpu.vector_store %arg6[%c0_13, %c0_14], %18 {strides = array<i32>} : memref<256x128xf32, #tpu.memory_space<vmem>>, vector<256x128xf32>,
      %20 = tpu.iota {dimensions = array<i32: 1>} : vector<256x128xi32>
      %c8_i32 = arith.constant 8 : i32
      %21 = vector.broadcast %c8_i32 : i32 to vector<256x128xi32>
      %22 = arith.cmpi slt, %20, %21 : vector<256x128xi32>
      %cst_15 = arith.constant -1.000000e+30 : f32
      %23 = vector.broadcast %cst_15 : f32 to vector<256x128xf32>
      %24 = arith.select %22, %18, %23 : vector<256x128xi1>, vector<256x128xf32>
      %cst_16 = arith.constant dense<0xFF800000> : vector<256xf32>
      %25 = vector.multi_reduction <maximumf>, %24, %cst_16 [1] : vector<256x128xf32> to vector<256xf32>
      %26 = vector.shape_cast %25 : vector<256xf32> to vector<256x1xf32>
      %27 = vector.broadcast %26 : vector<256x1xf32> to vector<256x128xf32>
      %28 = arith.subf %24, %27 : vector<256x128xf32>
      %29 = math.exp %28 : vector<256x128xf32>
      %cst_17 = arith.constant dense<0.000000e+00> : vector<256xf32>
      %30 = vector.multi_reduction <add>, %29, %cst_17 [1] : vector<256x128xf32> to vector<256xf32>
      %31 = vector.shape_cast %30 : vector<256xf32> to vector<256x1xf32>
      %32 = math.log %31 : vector<256x1xf32>
      %33 = arith.addf %32, %26 : vector<256x1xf32>
      %c0_18 = arith.constant 0 : index
      %c0_19 = arith.constant 0 : index
      %34 = vector.load %arg5[%c0_18, %c0_19] : memref<256x1xi32, #tpu.memory_space<vmem>>, vector<256x1xi32>
      %35 = vector.broadcast %34 : vector<256x1xi32> to vector<256x128xi32>
      %36 = arith.cmpi eq, %20, %35 : vector<256x128xi32>
      %37 = vector.broadcast %33 : vector<256x1xf32> to vector<256x128xf32>
      %38 = arith.subf %24, %37 : vector<256x128xf32>
      %cst_20 = arith.constant 0.000000e+00 : f32
      %39 = vector.broadcast %cst_20 : f32 to vector<256x128xf32>
      %40 = arith.select %36, %38, %39 : vector<256x128xi1>, vector<256x128xf32>
      %cst_21 = arith.constant dense<0.000000e+00> : vector<256xf32>
      %41 = vector.multi_reduction <add>, %40, %cst_21 [1] : vector<256x128xf32> to vector<256xf32>
      %42 = vector.shape_cast %41 : vector<256xf32> to vector<256x1xf32>
      %c0_i32_22 = arith.constant 0 : i32
      %43 = vector.broadcast %c0_i32_22 : i32 to vector<256x1xi32>
      %44 = arith.cmpi sge, %34, %43 : vector<256x1xi32>
      %cst_23 = arith.constant 0.000000e+00 : f32
      %45 = vector.broadcast %cst_23 : f32 to vector<256x1xf32>
      %46 = arith.subf %45, %42 : vector<256x1xf32>
      %cst_24 = arith.constant 0.000000e+00 : f32
      %47 = vector.broadcast %cst_24 : f32 to vector<256x1xf32>
      %48 = arith.select %44, %46, %47 : vector<256x1xi1>, vector<256x1xf32>
      %c0_25 = arith.constant 0 : index
      %c0_26 = arith.constant 0 : index
      %49 = vector.load %arg7[%c0_25, %c0_26] : memref<256x1xf32, #tpu.memory_space<vmem>>, vector<256x1xf32>
      tpu.vector_store %arg7[%c0_25, %c0_26], %48 {strides = array<i32>} : memref<256x1xf32, #tpu.memory_space<vmem>>, vector<256x1xf32>,
    } else {
    }
    return
  }
  func.func @transform_0(%arg0: i32, %arg1: i32) -> (i32, i32) {
    %c0_i32 = arith.constant 0 : i32
    return %arg0, %arg1 : i32, i32
  }
  func.func @transform_1(%arg0: i32, %arg1: i32) -> (i32, i32) {
    %c0_i32 = arith.constant 0 : i32
    %c0_i32_0 = arith.constant 0 : i32
    %c0_i32_1 = arith.constant 0 : i32
    return %c0_i32, %c0_i32_0 : i32, i32
  }
  func.func @transform_2(%arg0: i32, %arg1: i32) -> (i32, i32) {
    %c0_i32 = arith.constant 0 : i32
    %c0_i32_0 = arith.constant 0 : i32
    %c0_i32_1 = arith.constant 0 : i32
    return %c0_i32, %c0_i32_0 : i32, i32
  }
  func.func @transform_3(%arg0: i32, %arg1: i32) -> (i32, i32) {
    %c0_i32 = arith.constant 0 : i32
    %c0_i32_0 = arith.constant 0 : i32
    return %arg0, %c0_i32 : i32, i32
  }
  func.func @transform_4(%arg0: i32, %arg1: i32) -> (i32, i32) {
    %c0_i32 = arith.constant 0 : i32
    %c0_i32_0 = arith.constant 0 : i32
    return %arg0, %c0_i32 : i32, i32
  }
  func.func @transform_5(%arg0: i32, %arg1: i32) -> (i32, i32) {
    %c0_i32 = arith.constant 0 : i32
    %c0_i32_0 = arith.constant 0 : i32
    return %arg0, %c0_i32 : i32, i32
  }
}

</mosaic_0001>

<bundles_post_ra>
// kernel: tpu_custom_call.1
= control target key start
LH: loop header
LB: loop body
LE: loop exit
PB: predicated region body
PF: predicated region fallthrough
CT: control target
= control target key end

     0   :  { %11 = vsyncpa [#allocation3], 0  ;;  %s3004_s0 = inlined_call_operand.vmem [shape: bf16[256,256], index: 0, kind: input, shape index: {}]   ;;  %s3005_s1 = inlined_call_operand.hbm [shape: bf16[256,128], index: 1, kind: input, shape index: {}]   ;;  %s3006_s2 = inlined_call_operand.vmem [shape: f32[1,128], index: 2, kind: input, shape index: {}]   ;;  %s3007_s3 = inlined_call_operand.vmem [shape: s32[256,1], index: 3, kind: input, shape index: {}]   ;;  %s3008_s4 = inlined_call_operand.hbm [shape: f32[256,128], index: 4, kind: output, shape index: {0}]   ;;  %s3009_s5 = inlined_call_operand.vmem [shape: f32[256,1], index: 5, kind: output, shape index: {1}]  }
   0x1   :  { %12 = vsyncpa [#allocation4], 0  ;;  %s2011_s18 = smov [#allocation2]   ;;  %s1963_s22 = scalar_lea.hbm %s3005_s1, 2048 }
   0x2   :  { %s20_s19 = sshll.u32 %s2011_s18, 4  ;;  %p1964_p0 = scmp.ne.s32.totalorder %s3005_s1, %s1963_s22  ;;  %s21_s19 = int_to_ptr.vmem [resolvable:$true] %s20_s19 }
   0x3   :  { %p1967_p1 = scmp.lt.u32.totalorder %s1963_s22, %s3005_s1 }
   0x5   :  { %p1969_p2 = pnand %p1967_p1, %p1964_p0 }
   0x7   :  { %1972 = shalt.err (!%p1969_p2)
}
   0x8   :  { %s1973_s27 = scalar_lea.vmem %s21_s19, 2048  ;;  %p1978_p4 = scmp.lt.s32.totalorder %s21_s19, %s21_s19 }
   0x9   :  { %p1974_p3 = scmp.ne.s32.totalorder %s21_s19, %s1973_s27  ;;  %p1979_p5 = scmp.lt.s32.totalorder %s1973_s27, %s1973_s27 }
   0xb   :  { %p1980_p6 = por %p1979_p5, %p1978_p4 }
   0xd   :  { %p1981_p7 = pnand %p1980_p6, %p1974_p3 }
   0xf   :  { %1984 = shalt.err (!%p1981_p7)
}
  0x10   :  { %s2012_s28 = smov 64   ;;  %s2013_s29 = smov 4  }
  0x11   :  { %26 = dma.hbm_to_vmem [thread:$0]  %s3005_s1, 2048, %s21_s19, [#allocation3], %s2012_s28, %s2012_s28, %s2013_s29  }
  0x12   :  { %2007 = dma.done.wait [#allocation3], 2048  }
  0x13   :  { %2008 = vsyncadd [#allocation3], 4294965248  ;;  %v2014_v0 = vmov 0   ;;  %v1741_v1 = vld [vmem:[#allocation2 + $0x40] sm:$0xff]   ;;  %v1743_v3 = vld [vmem:[#allocation2 + $0x48] sm:$0xff]   ;;  %s2015_s30 = smov [#allocation5]  }
  0x14   :  { %1740 = vset.pattern.permute.xlu1 %v2014_v0  ;;  %1739 = vset.pattern.permute.xlu0 %v2014_v0  ;;  %v1742_v2 = vld [vmem:[#allocation2] sm:$0xff]   ;;  %v1744_v4 = vld [vmem:[#allocation2 + $0x8] sm:$0xff]   ;;  %v1745_v5 = vld [vmem:[#allocation2 + $0x50] sm:$0xff]   ;;  %s1536_s6 = sshll.u32 %s2015_s30, 4  ;;  %s1537_s6 = int_to_ptr.vmem [resolvable:$true] %s1536_s6 }
  0x15   :  { %1603 = vmatprep.subr.bf16.mxu0 %v1741_v1  ;;  %1715 = vmatprep.subr.bf16.mxu1 %v1741_v1  ;;  %v1746_v6 = vld [vmem:[#allocation2 + $0x10] sm:$0xff]   ;;  %v1747_v7 = vld [vmem:[#allocation2 + $0x58] sm:$0xff]   ;;  %v1749_v9 = vld [vmem:[#allocation2 + $0x60] sm:$0xff]   ;;  %s1985_s1 = scalar_lea.vmem %s1537_s6, 4096  ;;  %p1990_p9 = scmp.lt.s32.totalorder %s1537_s6, %s1537_s6 }
  0x16   :  { %1604 = vmatpush3.bf16.msra.mxu0 %v1742_v2  ;;  %1723 = vmatpush3.bf16.msra.mxu1 %v1742_v2  ;;  %v1748_v8 = vld [vmem:[#allocation2 + $0x18] sm:$0xff]   ;;  %v1750_v10 = vld [vmem:[#allocation2 + $0x20] sm:$0xff]   ;;  %v1751_v11 = vld [vmem:[#allocation2 + $0x68] sm:$0xff]   ;;  %p1986_p8 = scmp.ne.s32.totalorder %s1537_s6, %s1985_s1  ;;  %p1991_p10 = scmp.lt.s32.totalorder %s1985_s1, %s1985_s1 }
  0x17   :  { %1605 = vmatprep.subr.bf16.mxu0 %v1743_v3  ;;  %1716 = vmatprep.subr.bf16.mxu1 %v1743_v3  ;;  %v1759_v12 = vld [vmem:[%s3004_s0 + $0x4] ss:$8 sps:$4 sm:$0xff]   ;;  %v1753_v15 = vld [vmem:[#allocation2 + $0x70] sm:$0xff]   ;;  %v1755_v17 = vld [vmem:[#allocation2 + $0x78] sm:$0xff]  }
  0x18   :  { %v1762_v13 = vld [vmem:[%s3004_s0 + $0x84] ss:$8 sps:$4 sm:$0xff]   ;;  %460 = vmatprep.mubr.bf16.mxu0 %v1759_v12  ;;  %v1754_v16 = vld [vmem:[#allocation2 + $0x30] sm:$0xff]   ;;  %v1756_v18 = vld [vmem:[#allocation2 + $0x38] sm:$0xff]   ;;  %p1992_p11 = por %p1991_p10, %p1990_p9 }
  0x19   :  { %v1752_v14 = vld [vmem:[#allocation2 + $0x28] sm:$0xff]   ;;  %524 = vmatprep.mubr.bf16.mxu1 %v1762_v13  ;;  %v1763_v21 = vld [vmem:[%s3004_s0 + $0x14] ss:$8 sps:$4 sm:$0xff]   ;;  %v1765_v24 = vld [vmem:[%s3004_s0 + $0x10] ss:$8 sps:$4 sm:$0xff]  }
  0x1a   :  { %1606 = vmatpush3.bf16.msra.mxu0 %v1744_v4  ;;  %1724 = vmatpush3.bf16.msra.mxu1 %v1744_v4  ;;  %v1757_v19 = vld [vmem:[%s3004_s0] ss:$8 sps:$4 sm:$0xff]   ;;  %v1766_v22 = vld [vmem:[%s3004_s0 + $0x94] ss:$8 sps:$4 sm:$0xff]   ;;  %v1768_v25 = vld [vmem:[%s3004_s0 + $0x90] ss:$8 sps:$4 sm:$0xff]   ;;  %p1993_p12 = pnand %p1992_p11, %p1986_p8 }
  0x1b   :  { %1607 = vmatprep.subr.bf16.mxu0 %v1745_v5  ;;  %1717 = vmatprep.subr.bf16.mxu1 %v1745_v5  ;;  %v1760_v20 = vld [vmem:[%s3004_s0 + $0x80] ss:$8 sps:$4 sm:$0xff]   ;;  %v1769_v26 = vld [vmem:[%s3004_s0 + $0x24] ss:$8 sps:$4 sm:$0xff]   ;;  %v1116_v28 = vld [vmem:[%s3007_s3 + $0x10] sm:$0xff] }
  0x1c   :  { %v1115_v23 = vld [vmem:[%s3007_s3 + $0x8] sm:$0xff]  ;;  %v1114_v29 = vld [vmem:[%s3007_s3] sm:$0xff]  ;;  %v1117_v30 = vld [vmem:[%s3007_s3 + $0x18] sm:$0xff] }
  0x1d   :  { %1150 = vperm.xlu1 %1740, %v1115_v23   ;;  %v1772_v27 = vld [vmem:[%s3004_s0 + $0xa4] ss:$8 sps:$4 sm:$0xff]   ;;  %1147 = vperm.xlu0 %1739, %v1114_v29   ;;  %v1771_v32 = vld [vmem:[%s3004_s0 + $0x20] ss:$8 sps:$4 sm:$0xff]   ;;  %v1775_v34 = vld [vmem:[%s3004_s0 + $0x34] ss:$8 sps:$4 sm:$0xff]  }
  0x1e   :  { %1608 = vmatpush3.bf16.msra.mxu0 %v1746_v6  ;;  %1725 = vmatpush3.bf16.msra.mxu1 %v1746_v6  ;;  %v1123_v31 = vld [vmem:[%s3007_s3 + $0x48] sm:$0xff]  ;;  %v1778_v35 = vld [vmem:[%s3004_s0 + $0xb4] ss:$8 sps:$4 sm:$0xff]   ;;  %v1118_v36 = vld [vmem:[%s3007_s3 + $0x20] sm:$0xff] }
  0x1f   :  { %1609 = vmatprep.subr.bf16.mxu0 %v1747_v7  ;;  %1718 = vmatprep.subr.bf16.mxu1 %v1747_v7  ;;  %v1774_v33 = vld [vmem:[%s3004_s0 + $0xa0] ss:$8 sps:$4 sm:$0xff]   ;;  %v1125_v37 = vld [vmem:[%s3007_s3 + $0x58] sm:$0xff]  ;;  %v1781_v42 = vld [vmem:[%s3004_s0 + $0x44] ss:$8 sps:$4 sm:$0xff]  }
  0x20   :  { %v1119_v38 = vld [vmem:[%s3007_s3 + $0x28] sm:$0xff]  ;;  %v1777_v40 = vld [vmem:[%s3004_s0 + $0x30] ss:$8 sps:$4 sm:$0xff]   ;;  %v1787_v50 = vld [vmem:[%s3004_s0 + $0x54] ss:$8 sps:$4 sm:$0xff]  }
  0x21   :  { %1153 = vperm.xlu1 %1740, %v1116_v28   ;;  %1174 = vperm.xlu0 %1739, %v1123_v31   ;;  %v1127_v39 = vld [vmem:[%s3007_s3 + $0x68] sm:$0xff]  ;;  %v1780_v41 = vld [vmem:[%s3004_s0 + $0xb0] ss:$8 sps:$4 sm:$0xff]   ;;  %v1790_v51 = vld [vmem:[%s3004_s0 + $0xd4] ss:$8 sps:$4 sm:$0xff]  }
  0x22   :  { %1610 = vmatpush3.bf16.msra.mxu0 %v1748_v8  ;;  %1726 = vmatpush3.bf16.msra.mxu1 %v1748_v8  ;;  %v1784_v43 = vld [vmem:[%s3004_s0 + $0xc4] ss:$8 sps:$4 sm:$0xff]   ;;  %v1120_v44 = vld [vmem:[%s3007_s3 + $0x30] sm:$0xff]  ;;  %v1129_v45 = vld [vmem:[%s3007_s3 + $0x78] sm:$0xff] }
  0x23   :  { %1611 = vmatprep.subr.bf16.mxu0 %v1749_v9  ;;  %1719 = vmatprep.subr.bf16.mxu1 %v1749_v9  ;;  %v1121_v46 = vld [vmem:[%s3007_s3 + $0x38] sm:$0xff]  ;;  %v1131_v47 = vld [vmem:[%s3007_s3 + $0x88] sm:$0xff]  ;;  %v1122_v52 = vld [vmem:[%s3007_s3 + $0x40] sm:$0xff] }
  0x24   :  { %v1783_v48 = vld [vmem:[%s3004_s0 + $0x40] ss:$8 sps:$4 sm:$0xff]   ;;  %v1133_v53 = vld [vmem:[%s3007_s3 + $0x98] sm:$0xff]  ;;  %v1124_v54 = vld [vmem:[%s3007_s3 + $0x50] sm:$0xff] }
  0x25   :  { %1156 = vperm.xlu1 %1740, %v1117_v30   ;;  %1180 = vperm.xlu0 %1739, %v1125_v37   ;;  %v1786_v49 = vld [vmem:[%s3004_s0 + $0xc0] ss:$8 sps:$4 sm:$0xff]   ;;  %v1789_v56 = vld [vmem:[%s3004_s0 + $0x50] ss:$8 sps:$4 sm:$0xff]   ;;  %v1793_v58 = vld [vmem:[%s3004_s0 + $0x64] ss:$8 sps:$4 sm:$0xff]  }
  0x26   :  { %1612 = vmatpush3.bf16.msra.mxu0 %v1750_v10  ;;  %1727 = vmatpush3.bf16.msra.mxu1 %v1750_v10  ;;  %v1135_v55 = vld [vmem:[%s3007_s3 + $0xa8] sm:$0xff]  ;;  %v1792_v57 = vld [vmem:[%s3004_s0 + $0xd0] ss:$8 sps:$4 sm:$0xff]   ;;  %v1126_v60 = vld [vmem:[%s3007_s3 + $0x60] sm:$0xff] }
  0x27   :  { %1613 = vmatprep.subr.bf16.mxu0 %v1751_v11  ;;  %1720 = vmatprep.subr.bf16.mxu1 %v1751_v11  ;;  %v1796_v59 = vld [vmem:[%s3004_s0 + $0xe4] ss:$8 sps:$4 sm:$0xff]   ;;  %v1137_v61 = vld [vmem:[%s3007_s3 + $0xb8] sm:$0xff]  ;;  %v1128_v62 = vld [vmem:[%s3007_s3 + $0x70] sm:$0xff] }
  0x28   :  { %v1139_v63 = vld [vmem:[%s3007_s3 + $0xc8] sm:$0xff]  ;;  %v1799_v2 = vld [vmem:[%s3004_s0 + $0x74] ss:$8 sps:$4 sm:$0xff]   ;;  %v1130_v4 = vld [vmem:[%s3007_s3 + $0x80] sm:$0xff] }
  0x29   :  { %1159 = vperm.xlu1 %1740, %v1118_v36   ;;  %1186 = vperm.xlu0 %1739, %v1127_v39   ;;  %v1795_v0 = vld [vmem:[%s3004_s0 + $0x60] ss:$8 sps:$4 sm:$0xff]   ;;  %v1802_v3 = vld [vmem:[%s3004_s0 + $0xf4] ss:$8 sps:$4 sm:$0xff]   ;;  %v1801_v8 = vld [vmem:[%s3004_s0 + $0x70] ss:$8 sps:$4 sm:$0xff]  }
  0x2a   :  { %1614 = vmatpush3.bf16.msra.mxu0 %v1752_v14  ;;  %1728 = vmatpush3.bf16.msra.mxu1 %v1752_v14  ;;  %v1798_v1 = vld [vmem:[%s3004_s0 + $0xe0] ss:$8 sps:$4 sm:$0xff]   ;;  %v1141_v5 = vld [vmem:[%s3007_s3 + $0xd8] sm:$0xff]  ;;  %v1132_v6 = vld [vmem:[%s3007_s3 + $0x90] sm:$0xff] }
  0x2b   :  { %1615 = vmatprep.subr.bf16.mxu0 %v1753_v15  ;;  %1721 = vmatprep.subr.bf16.mxu1 %v1753_v15  ;;  %v1143_v7 = vld [vmem:[%s3007_s3 + $0xe8] sm:$0xff]  ;;  %v1804_v9 = vld [vmem:[%s3004_s0 + $0xf0] ss:$8 sps:$4 sm:$0xff]   ;;  %v1134_v10 = vld [vmem:[%s3007_s3 + $0xa0] sm:$0xff]  ;;  %v759_v15 = vlaneseq }
  0x2c   :  { %v1136_v11 = vld [vmem:[%s3007_s3 + $0xb0] sm:$0xff]  ;;  %v1138_v12 = vld [vmem:[%s3007_s3 + $0xc0] sm:$0xff] }
  0x2d   :  { %1162 = vperm.xlu1 %1740, %v1119_v38   ;;  %1192 = vperm.xlu0 %1739, %v1129_v45   ;;  %v1140_v13 = vld [vmem:[%s3007_s3 + $0xd0] sm:$0xff]  ;;  %v1142_v14 = vld [vmem:[%s3007_s3 + $0xe0] sm:$0xff] }
  0x2e   :  { %1616 = vmatpush3.bf16.msra.mxu0 %v1754_v16  ;;  %1729 = vmatpush3.bf16.msra.mxu1 %v1754_v16 }
  0x2f   :  { %1617 = vmatprep.subr.bf16.mxu0 %v1755_v17  ;;  %1722 = vmatprep.subr.bf16.mxu1 %v1755_v17 }
  0x31   :  { %1165 = vperm.xlu1 %1740, %v1120_v44   ;;  %1198 = vperm.xlu0 %1739, %v1131_v47  }
  0x32   :  { %1618 = vmatpush3.bf16.msra.mxu0 %v1756_v18  ;;  %1730 = vmatpush3.bf16.msra.mxu1 %v1756_v18  ;;  %v2246_v18 = vand.u32 127, %v759_v15 }
  0x34   :  { %vm761_vm0 = vcmp.lt.s32.totalorder %v2246_v18, 8 }
  0x35   :  { %461 = vmatmul.mubr.bf16.vlgmr.msra.gmra.mrb[0].mxu0 %v1757_v19  ;;  %525 = vmatmul.mubr.bf16.vlgmr.msra.gmra.mrb[0].mxu1 %v1760_v20 }
  0x36   :  { %468 = vmatprep.mubr.bf16.mxu0 %v1763_v21  ;;  %532 = vmatprep.mubr.bf16.mxu1 %v1766_v22 }
  0x37   :  { %1168 = vperm.xlu1 %1740, %v1121_v46   ;;  %1204 = vperm.xlu0 %1739, %v1133_v53  }
  0x3b   :  { %1171 = vperm.xlu1 %1740, %v1122_v52   ;;  %1210 = vperm.xlu0 %1739, %v1135_v55  }
  0x3d   :  { %469 = vmatmul.mubr.bf16.gmra.mrb[4].mxu0 %v1765_v24  ;;  %533 = vmatmul.mubr.bf16.gmra.mrb[4].mxu1 %v1768_v25 }
  0x3e   :  { %476 = vmatprep.mubr.bf16.mxu0 %v1769_v26  ;;  %540 = vmatprep.mubr.bf16.mxu1 %v1772_v27  ;;  %v2251_v27 = vld [vmem:[%s3006_s2] ss:$0 sm:$0xff] }
  0x3f   :  { %1177 = vperm.xlu1 %1740, %v1124_v54   ;;  %1216 = vperm.xlu0 %1739, %v1137_v61  }
  0x43   :  { %1183 = vperm.xlu1 %1740, %v1126_v60   ;;  %1222 = vperm.xlu0 %1739, %v1139_v63  }
  0x45   :  { %477 = vmatmul.mubr.bf16.gmra.mrb[8].mxu0 %v1771_v32  ;;  %541 = vmatmul.mubr.bf16.gmra.mrb[8].mxu1 %v1774_v33 }
  0x46   :  { %484 = vmatprep.mubr.bf16.mxu0 %v1775_v34  ;;  %548 = vmatprep.mubr.bf16.mxu1 %v1778_v35 }
  0x47   :  { %1189 = vperm.xlu1 %1740, %v1128_v62   ;;  %1228 = vperm.xlu0 %1739, %v1141_v5  }
  0x4b   :  { %1195 = vperm.xlu1 %1740, %v1130_v4   ;;  %1234 = vperm.xlu0 %1739, %v1143_v7  }
  0x4d   :  { %485 = vmatmul.mubr.bf16.gmra.mrb[12].mxu0 %v1777_v40  ;;  %549 = vmatmul.mubr.bf16.gmra.mrb[12].mxu1 %v1780_v41 }
  0x4e   :  { %492 = vmatprep.mubr.bf16.mxu0 %v1781_v42  ;;  %556 = vmatprep.mubr.bf16.mxu1 %v1784_v43 }
  0x4f   :  { %1201 = vperm.xlu1 %1740, %v1132_v6  }
  0x53   :  { %1207 = vperm.xlu1 %1740, %v1134_v10  }
  0x55   :  { %493 = vmatmul.mubr.bf16.gmra.mrb[16].mxu0 %v1783_v48  ;;  %557 = vmatmul.mubr.bf16.gmra.mrb[16].mxu1 %v1786_v49 }
  0x56   :  { %500 = vmatprep.mubr.bf16.mxu0 %v1787_v50  ;;  %564 = vmatprep.mubr.bf16.mxu1 %v1790_v51 }
  0x57   :  { %1213 = vperm.xlu1 %1740, %v1136_v11  }
  0x5b   :  { %1219 = vperm.xlu1 %1740, %v1138_v12  }
  0x5d   :  { %501 = vmatmul.mubr.bf16.gmra.mrb[20].mxu0 %v1789_v56  ;;  %565 = vmatmul.mubr.bf16.gmra.mrb[20].mxu1 %v1792_v57 }
  0x5e   :  { %508 = vmatprep.mubr.bf16.mxu0 %v1793_v58  ;;  %572 = vmatprep.mubr.bf16.mxu1 %v1796_v59 }
  0x5f   :  { %1225 = vperm.xlu1 %1740, %v1140_v13  }
  0x63   :  { %1231 = vperm.xlu1 %1740, %v1142_v14  }
  0x65   :  { %509 = vmatmul.mubr.bf16.gmra.mrb[24].mxu0 %v1795_v0  ;;  %573 = vmatmul.mubr.bf16.gmra.mrb[24].mxu1 %v1798_v1 }
  0x66   :  { %516 = vmatprep.mubr.bf16.mxu0 %v1799_v2  ;;  %580 = vmatprep.mubr.bf16.mxu1 %v1802_v3 }
  0x6d   :  { %517 = vmatmul.mubr.bf16.gmra.mrb[28].mxu0 %v1801_v8  ;;  %581 = vmatmul.mubr.bf16.gmra.mrb[28].mxu1 %v1804_v9 }
 0x108   :  { %v1619_v16 = vpop.f32.mrb[0].mxu0  ;;  %v1667_v17 = vpop.f32.mrb[0].mxu1 }
 0x109   :  { %v1620_v19 = vpop.f32.mrb[1].mxu0  ;;  %v1668_v20 = vpop.f32.mrb[1].mxu1 }
 0x10a   :  { %v1621_v21 = vadd.f32 %v1620_v19, %v1619_v16  ;;  %v1669_v22 = vadd.f32 %v1668_v20, %v1667_v17  ;;  %v1622_v23 = vpop.f32.mrb[2].mxu0  ;;  %v1670_v24 = vpop.f32.mrb[2].mxu1 }
 0x10b   :  { %v1623_v25 = vpop.f32.mrb[3].mxu0  ;;  %v1671_v26 = vpop.f32.mrb[3].mxu1 }
 0x10c   :  { %v1624_v28 = vadd.f32 %v1623_v25, %v1622_v23  ;;  %v1672_v29 = vadd.f32 %v1671_v26, %v1670_v24  ;;  %v695_v30 = vadd.f32 %v1621_v21, %v2251_v27  ;;  %v711_v31 = vadd.f32 %v1669_v22, %v2251_v27 }
 0x10e   :  { %v2258_v34 = vsel %vm761_vm0, %v695_v30, -1e+30  ;;  %727 = vst [vmem:[#allocation5] sm:$0xff] %v695_v30  ;;  %v712_v35 = vadd.f32 %v1672_v29, %v2251_v27  ;;  %743 = vst [vmem:[#allocation5 + $0x80] sm:$0xff] %v711_v31  ;;  %v696_v36 = vadd.f32 %v1624_v28, %v2251_v27  ;;  %v2269_v44 = vsel %vm761_vm0, %v711_v31, -1e+30 }
 0x10f   :  { %794 = vmax.xlane.f32.xlu0 %v2258_v34 }
 0x110   :  { %v1625_v32 = vpop.f32.mrb[4].mxu0  ;;  %v1673_v33 = vpop.f32.mrb[4].mxu1  ;;  %v2265_v43 = vsel %vm761_vm0, %v712_v35, -1e+30  ;;  %744 = vst [vmem:[#allocation5 + $0x88] sm:$0xff] %v712_v35  ;;  %728 = vst [vmem:[#allocation5 + $0x8] sm:$0xff] %v696_v36 }
 0x111   :  { %v1626_v37 = vpop.f32.mrb[5].mxu0  ;;  %v1674_v38 = vpop.f32.mrb[5].mxu1  ;;  %828 = vmax.xlane.f32.xlu1 %v2265_v43  ;;  %v2281_v54 = vsel %vm761_vm0, %v696_v36, -1e+30 }
 0x112   :  { %v1627_v39 = vadd.f32 %v1626_v37, %v1625_v32  ;;  %v1628_v40 = vpop.f32.mrb[6].mxu0  ;;  %v1675_v41 = vadd.f32 %v1674_v38, %v1673_v33  ;;  %v1676_v42 = vpop.f32.mrb[6].mxu1 }
 0x113   :  { %v1629_v45 = vpop.f32.mrb[7].mxu0  ;;  %v1677_v46 = vpop.f32.mrb[7].mxu1  ;;  %826 = vmax.xlane.f32.xlu0 %v2269_v44 }
 0x114   :  { %v1630_v47 = vadd.f32 %v1629_v45, %v1628_v40  ;;  %v1678_v48 = vadd.f32 %v1677_v46, %v1676_v42  ;;  %v697_v49 = vadd.f32 %v1627_v39, %v2251_v27  ;;  %v713_v50 = vadd.f32 %v1675_v41, %v2251_v27 }
 0x116   :  { %v2277_v53 = vsel %vm761_vm0, %v697_v49, -1e+30  ;;  %729 = vst [vmem:[#allocation5 + $0x10] sm:$0xff] %v697_v49  ;;  %v698_v55 = vadd.f32 %v1630_v47, %v2251_v27  ;;  %745 = vst [vmem:[#allocation5 + $0x90] sm:$0xff] %v713_v50  ;;  %v714_v56 = vadd.f32 %v1678_v48, %v2251_v27  ;;  %v2293_v0 = vsel %vm761_vm0, %v713_v50, -1e+30 }
 0x117   :  { %798 = vmax.xlane.f32.xlu1 %v2277_v53  ;;  %796 = vmax.xlane.f32.xlu0 %v2281_v54 }
 0x118   :  { %v1631_v51 = vpop.f32.mrb[8].mxu0  ;;  %v1679_v52 = vpop.f32.mrb[8].mxu1  ;;  %730 = vst [vmem:[#allocation5 + $0x18] sm:$0xff] %v698_v55  ;;  %v2289_v63 = vsel %vm761_vm0, %v698_v55, -1e+30  ;;  %746 = vst [vmem:[#allocation5 + $0x98] sm:$0xff] %v714_v56 }
 0x119   :  { %v1632_v57 = vpop.f32.mrb[9].mxu0  ;;  %v1680_v58 = vpop.f32.mrb[9].mxu1  ;;  %v2299_v5 = vsel %vm761_vm0, %v714_v56, -1e+30 }
 0x11a   :  { %v1633_v59 = vadd.f32 %v1632_v57, %v1631_v51  ;;  %v1634_v60 = vpop.f32.mrb[10].mxu0  ;;  %v1681_v61 = vadd.f32 %v1680_v58, %v1679_v52  ;;  %v1682_v62 = vpop.f32.mrb[10].mxu1 }
 0x11b   :  { %v1635_v1 = vpop.f32.mrb[11].mxu0  ;;  %v1683_v2 = vpop.f32.mrb[11].mxu1  ;;  %800 = vmax.xlane.f32.xlu1 %v2289_v63  ;;  %830 = vmax.xlane.f32.xlu0 %v2293_v0 }
 0x11c   :  { %v1636_v3 = vadd.f32 %v1635_v1, %v1634_v60  ;;  %v1684_v4 = vadd.f32 %v1683_v2, %v1682_v62  ;;  %v699_v6 = vadd.f32 %v1633_v59, %v2251_v27  ;;  %v715_v7 = vadd.f32 %v1681_v61, %v2251_v27 }
 0x11e   :  { %731 = vst [vmem:[#allocation5 + $0x20] sm:$0xff] %v699_v6  ;;  %v2305_v10 = vsel %vm761_vm0, %v699_v6, -1e+30  ;;  %v700_v11 = vadd.f32 %v1636_v3, %v2251_v27  ;;  %747 = vst [vmem:[#allocation5 + $0xa0] sm:$0xff] %v715_v7  ;;  %v716_v12 = vadd.f32 %v1684_v4, %v2251_v27  ;;  %v2317_v21 = vsel %vm761_vm0, %v715_v7, -1e+30 }
 0x11f   :  { %832 = vmax.xlane.f32.xlu1 %v2299_v5  ;;  %802 = vmax.xlane.f32.xlu0 %v2305_v10  ;;  %3035 = vst [vmem:[#allocation9_spill] sm:$0xff] %v2317_v21 }
 0x120   :  { %v1637_v8 = vpop.f32.mrb[12].mxu0  ;;  %v1685_v9 = vpop.f32.mrb[12].mxu1  ;;  %732 = vst [vmem:[#allocation5 + $0x28] sm:$0xff] %v700_v11  ;;  %v2313_v20 = vsel %vm761_vm0, %v700_v11, -1e+30  ;;  %748 = vst [vmem:[#allocation5 + $0xa8] sm:$0xff] %v716_v12 }
 0x121   :  { %v1638_v13 = vpop.f32.mrb[13].mxu0  ;;  %v1686_v14 = vpop.f32.mrb[13].mxu1  ;;  %3034 = vst [vmem:[#allocation8_spill] sm:$0xff] %v2313_v20  ;;  %v2323_v26 = vsel %vm761_vm0, %v716_v12, -1e+30 }
 0x122   :  { %v1639_v15 = vadd.f32 %v1638_v13, %v1637_v8  ;;  %v1640_v16 = vpop.f32.mrb[14].mxu0  ;;  %v1687_v17 = vadd.f32 %v1686_v14, %v1685_v9  ;;  %v1688_v19 = vpop.f32.mrb[14].mxu1  ;;  %3036 = vst [vmem:[#allocation10_spill] sm:$0xff] %v2323_v26 }
 0x123   :  { %v1641_v22 = vpop.f32.mrb[15].mxu0  ;;  %v1689_v23 = vpop.f32.mrb[15].mxu1  ;;  %804 = vmax.xlane.f32.xlu1 %v2313_v20  ;;  %834 = vmax.xlane.f32.xlu0 %v2317_v21 }
 0x124   :  { %v1642_v24 = vadd.f32 %v1641_v22, %v1640_v16  ;;  %v1690_v25 = vadd.f32 %v1689_v23, %v1688_v19  ;;  %v701_v28 = vadd.f32 %v1639_v15, %v2251_v27  ;;  %v717_v29 = vadd.f32 %v1687_v17, %v2251_v27  ;;  %v2375_v15 = vpop.permute.xlu1 %1150 }
 0x125   :  { %vm1243_vm3 = vcmp.eq.s32.totalorder %v2246_v18, %v2375_v15 }
 0x126   :  { %733 = vst [vmem:[#allocation5 + $0x30] sm:$0xff] %v701_v28  ;;  %v2329_v32 = vsel %vm761_vm0, %v701_v28, -1e+30  ;;  %v702_v33 = vadd.f32 %v1642_v24, %v2251_v27  ;;  %749 = vst [vmem:[#allocation5 + $0xb0] sm:$0xff] %v717_v29  ;;  %v718_v35 = vadd.f32 %v1690_v25, %v2251_v27  ;;  %v2341_v45 = vsel %vm761_vm0, %v717_v29, -1e+30 }
 0x127   :  { %3037 = vst [vmem:[#allocation11_spill] sm:$0xff] %v2329_v32  ;;  %836 = vmax.xlane.f32.xlu1 %v2323_v26  ;;  %806 = vmax.xlane.f32.xlu0 %v2329_v32  ;;  %3039 = vst [vmem:[#allocation13_spill] sm:$0xff] %v2341_v45 }
 0x128   :  { %v1643_v30 = vpop.f32.mrb[16].mxu0  ;;  %v1691_v31 = vpop.f32.mrb[16].mxu1  ;;  %734 = vst [vmem:[#allocation5 + $0x38] sm:$0xff] %v702_v33  ;;  %v2337_v42 = vsel %vm761_vm0, %v702_v33, -1e+30  ;;  %750 = vst [vmem:[#allocation5 + $0xb8] sm:$0xff] %v718_v35 }
 0x129   :  { %v1644_v36 = vpop.f32.mrb[17].mxu0  ;;  %v1692_v37 = vpop.f32.mrb[17].mxu1  ;;  %3038 = vst [vmem:[#allocation12_spill] sm:$0xff] %v2337_v42  ;;  %v2347_v50 = vsel %vm761_vm0, %v718_v35, -1e+30 }
 0x12a   :  { %v1645_v38 = vadd.f32 %v1644_v36, %v1643_v30  ;;  %v1646_v39 = vpop.f32.mrb[18].mxu0  ;;  %v1693_v40 = vadd.f32 %v1692_v37, %v1691_v31  ;;  %v1694_v41 = vpop.f32.mrb[18].mxu1  ;;  %3040 = vst [vmem:[#allocation14_spill] sm:$0xff] %v2347_v50 }
 0x12b   :  { %v1647_v46 = vpop.f32.mrb[19].mxu0  ;;  %v1695_v47 = vpop.f32.mrb[19].mxu1  ;;  %808 = vmax.xlane.f32.xlu1 %v2337_v42  ;;  %838 = vmax.xlane.f32.xlu0 %v2341_v45 }
 0x12c   :  { %v1648_v48 = vadd.f32 %v1647_v46, %v1646_v39  ;;  %v1696_v49 = vadd.f32 %v1695_v47, %v1694_v41  ;;  %v703_v51 = vadd.f32 %v1645_v38, %v2251_v27  ;;  %v719_v52 = vadd.f32 %v1693_v40, %v2251_v27  ;;  %v2399_v41 = vpop.permute.xlu1 %1153 }
 0x12d   :  { %vm1244_vm4 = vcmp.eq.s32.totalorder %v2246_v18, %v2399_v41 }
 0x12e   :  { %735 = vst [vmem:[#allocation5 + $0x40] sm:$0xff] %v703_v51  ;;  %v2353_v57 = vsel %vm761_vm0, %v703_v51, -1e+30  ;;  %v704_v58 = vadd.f32 %v1648_v48, %v2251_v27  ;;  %751 = vst [vmem:[#allocation5 + $0xc0] sm:$0xff] %v719_v52  ;;  %v720_v59 = vadd.f32 %v1696_v49, %v2251_v27  ;;  %v2365_v6 = vsel %vm761_vm0, %v719_v52, -1e+30 }
 0x12f   :  { %840 = vmax.xlane.f32.xlu1 %v2347_v50  ;;  %810 = vmax.xlane.f32.xlu0 %v2353_v57  ;;  %3042 = vst [vmem:[#allocation16_spill] sm:$0xff] %v2365_v6 }
 0x130   :  { %v1649_v55 = vpop.f32.mrb[20].mxu0  ;;  %v1697_v56 = vpop.f32.mrb[20].mxu1  ;;  %736 = vst [vmem:[#allocation5 + $0x48] sm:$0xff] %v704_v58  ;;  %v2361_v4 = vsel %vm761_vm0, %v704_v58, -1e+30  ;;  %752 = vst [vmem:[#allocation5 + $0xc8] sm:$0xff] %v720_v59 }
 0x131   :  { %v1650_v60 = vpop.f32.mrb[21].mxu0  ;;  %v1698_v61 = vpop.f32.mrb[21].mxu1  ;;  %3041 = vst [vmem:[#allocation15_spill] sm:$0xff] %v2361_v4  ;;  %v2371_v12 = vsel %vm761_vm0, %v720_v59, -1e+30 }
 0x132   :  { %v1651_v62 = vadd.f32 %v1650_v60, %v1649_v55  ;;  %v1652_v1 = vpop.f32.mrb[22].mxu0  ;;  %v1699_v2 = vadd.f32 %v1698_v61, %v1697_v56  ;;  %v1700_v3 = vpop.f32.mrb[22].mxu1  ;;  %3043 = vst [vmem:[#allocation17_spill] sm:$0xff] %v2371_v12 }
 0x133   :  { %v1653_v7 = vpop.f32.mrb[23].mxu0  ;;  %v1701_v8 = vpop.f32.mrb[23].mxu1  ;;  %812 = vmax.xlane.f32.xlu1 %v2361_v4  ;;  %842 = vmax.xlane.f32.xlu0 %v2365_v6 }
 0x134   :  { %v1654_v9 = vadd.f32 %v1653_v7, %v1652_v1  ;;  %v1702_v11 = vadd.f32 %v1701_v8, %v1700_v3  ;;  %v705_v13 = vadd.f32 %v1651_v62, %v2251_v27  ;;  %v721_v14 = vadd.f32 %v1699_v2, %v2251_v27  ;;  %v2419_v8 = vpop.permute.xlu1 %1156 }
 0x135   :  { %vm1245_vm6 = vcmp.eq.s32.totalorder %v2246_v18, %v2419_v8 }
 0x136   :  { %737 = vst [vmem:[#allocation5 + $0x50] sm:$0xff] %v705_v13  ;;  %v2379_v19 = vsel %vm761_vm0, %v705_v13, -1e+30  ;;  %v706_v22 = vadd.f32 %v1654_v9, %v2251_v27  ;;  %753 = vst [vmem:[#allocation5 + $0xd0] sm:$0xff] %v721_v14  ;;  %v722_v23 = vadd.f32 %v1702_v11, %v2251_v27  ;;  %v2391_v35 = vsel %vm761_vm0, %v721_v14, -1e+30 }
 0x137   :  { %844 = vmax.xlane.f32.xlu1 %v2371_v12  ;;  %814 = vmax.xlane.f32.xlu0 %v2379_v19  ;;  %3045 = vst [vmem:[#allocation19_spill] sm:$0xff] %v2391_v35 }
 0x138   :  { %v1655_v16 = vpop.f32.mrb[24].mxu0  ;;  %v1703_v17 = vpop.f32.mrb[24].mxu1  ;;  %738 = vst [vmem:[#allocation5 + $0x58] sm:$0xff] %v706_v22  ;;  %v2387_v33 = vsel %vm761_vm0, %v706_v22, -1e+30  ;;  %754 = vst [vmem:[#allocation5 + $0xd8] sm:$0xff] %v722_v23 }
 0x139   :  { %v1656_v24 = vpop.f32.mrb[25].mxu0  ;;  %v1704_v25 = vpop.f32.mrb[25].mxu1  ;;  %3044 = vst [vmem:[#allocation18_spill] sm:$0xff] %v2387_v33  ;;  %v2397_v40 = vsel %vm761_vm0, %v722_v23, -1e+30 }
 0x13a   :  { %v1657_v28 = vadd.f32 %v1656_v24, %v1655_v16  ;;  %v1658_v29 = vpop.f32.mrb[26].mxu0  ;;  %v1705_v30 = vadd.f32 %v1704_v25, %v1703_v17  ;;  %v1706_v31 = vpop.f32.mrb[26].mxu1  ;;  %3046 = vst [vmem:[#allocation20_spill] sm:$0xff] %v2397_v40 }
 0x13b   :  { %v1659_v36 = vpop.f32.mrb[27].mxu0  ;;  %v1707_v37 = vpop.f32.mrb[27].mxu1  ;;  %816 = vmax.xlane.f32.xlu1 %v2387_v33  ;;  %846 = vmax.xlane.f32.xlu0 %v2391_v35 }
 0x13c   :  { %v1660_v38 = vadd.f32 %v1659_v36, %v1658_v29  ;;  %v1708_v39 = vadd.f32 %v1707_v37, %v1706_v31  ;;  %v707_v46 = vadd.f32 %v1657_v28, %v2251_v27  ;;  %v723_v47 = vadd.f32 %v1705_v30, %v2251_v27  ;;  %v2437_v24 = vpop.permute.xlu1 %1159  ;;  %v2458_v31 = vpop.permute.xlu0 %1147 }
 0x13d   :  { %vm1242_vm1 = vcmp.eq.s32.totalorder %v2246_v18, %v2458_v31  ;;  %vm1246_vm8 = vcmp.eq.s32.totalorder %v2246_v18, %v2437_v24 }
 0x13e   :  { %739 = vst [vmem:[#allocation5 + $0x60] sm:$0xff] %v707_v46  ;;  %v2405_v51 = vsel %vm761_vm0, %v707_v46, -1e+30  ;;  %v708_v52 = vadd.f32 %v1660_v38, %v2251_v27  ;;  %755 = vst [vmem:[#allocation5 + $0xe0] sm:$0xff] %v723_v47  ;;  %v724_v55 = vadd.f32 %v1708_v39, %v2251_v27  ;;  %v2417_v2 = vsel %vm761_vm0, %v723_v47, -1e+30 }
 0x13f   :  { %3047 = vst [vmem:[#allocation21_spill] sm:$0xff] %v2405_v51  ;;  %848 = vmax.xlane.f32.xlu1 %v2397_v40  ;;  %818 = vmax.xlane.f32.xlu0 %v2405_v51  ;;  %3049 = vst [vmem:[#allocation23_spill] sm:$0xff] %v2417_v2 }
 0x140   :  { %v1661_v48 = vpop.f32.mrb[28].mxu0  ;;  %v1709_v49 = vpop.f32.mrb[28].mxu1  ;;  %740 = vst [vmem:[#allocation5 + $0x68] sm:$0xff] %v708_v52  ;;  %v2413_v1 = vsel %vm761_vm0, %v708_v52, -1e+30  ;;  %756 = vst [vmem:[#allocation5 + $0xe8] sm:$0xff] %v724_v55 }
 0x141   :  { %v1662_v56 = vpop.f32.mrb[29].mxu0  ;;  %v1710_v58 = vpop.f32.mrb[29].mxu1  ;;  %3048 = vst [vmem:[#allocation22_spill] sm:$0xff] %v2413_v1  ;;  %v2425_v13 = vsel %vm761_vm0, %v724_v55, -1e+30 }
 0x142   :  { %v1663_v59 = vadd.f32 %v1662_v56, %v1661_v48  ;;  %v1664_v60 = vpop.f32.mrb[30].mxu0  ;;  %v1711_v61 = vadd.f32 %v1710_v58, %v1709_v49  ;;  %v1712_v62 = vpop.f32.mrb[30].mxu1  ;;  %3050 = vst [vmem:[#allocation24_spill] sm:$0xff] %v2425_v13 }
 0x143   :  { %v1665_v3 = vpop.f32.mrb[31].mxu0  ;;  %v1713_v7 = vpop.f32.mrb[31].mxu1  ;;  %820 = vmax.xlane.f32.xlu1 %v2413_v1  ;;  %850 = vmax.xlane.f32.xlu0 %v2417_v2 }
 0x144   :  { %v1666_v9 = vadd.f32 %v1665_v3, %v1664_v60  ;;  %v1714_v11 = vadd.f32 %v1713_v7, %v1712_v62  ;;  %v709_v14 = vadd.f32 %v1663_v59, %v2251_v27  ;;  %v725_v16 = vadd.f32 %v1711_v61, %v2251_v27  ;;  %v2462_v37 = vpop.permute.xlu0 %1174 }
 0x145   :  { %3055 = vst [vmem:[#allocation29_spill] sm:$0xff] %v2462_v37 }
 0x146   :  { %741 = vst [vmem:[#allocation5 + $0x70] sm:$0xff] %v709_v14  ;;  %v2431_v17 = vsel %vm761_vm0, %v709_v14, -1e+30  ;;  %v710_v22 = vadd.f32 %v1666_v9, %v2251_v27  ;;  %757 = vst [vmem:[#allocation5 + $0xf0] sm:$0xff] %v725_v16  ;;  %v726_v23 = vadd.f32 %v1714_v11, %v2251_v27  ;;  %v2445_v28 = vsel %vm761_vm0, %v725_v16, -1e+30  ;;  %v2453_v27 = vpop.permute.xlu1 %1162 }
 0x147   :  { %852 = vmax.xlane.f32.xlu1 %v2425_v13  ;;  %822 = vmax.xlane.f32.xlu0 %v2431_v17  ;;  %3052 = vst [vmem:[#allocation26_spill] sm:$0xff] %v2453_v27 }
 0x148   :  { %742 = vst [vmem:[#allocation5 + $0x78] sm:$0xff] %v710_v22  ;;  %v2441_v25 = vsel %vm761_vm0, %v710_v22, -1e+30  ;;  %758 = vst [vmem:[#allocation5 + $0xf8] sm:$0xff] %v726_v23  ;;  %v2449_v29 = vsel %vm761_vm0, %v726_v23, -1e+30  ;;  %v2466_v39 = vpop.permute.xlu0 %1180 }
 0x149   :  { %3051 = vst [vmem:[#allocation25_spill] sm:$0xff] %v2441_v25  ;;  %3057 = vst [vmem:[#allocation31_spill] sm:$0xff] %v2466_v39 }
 0x14a   :  { %v2456_v30 = vpop.permute.xlu1 %1165 }
 0x14b   :  { %824 = vmax.xlane.f32.xlu1 %v2441_v25  ;;  %854 = vmax.xlane.f32.xlu0 %v2445_v28  ;;  %3053 = vst [vmem:[#allocation27_spill] sm:$0xff] %v2456_v30 }
 0x14c   :  { %v2470_v47 = vpop.permute.xlu0 %1186 }
 0x14d   :  { %3059 = vst [vmem:[#allocation33_spill] sm:$0xff] %v2470_v47 }
 0x14e   :  { %v2460_v36 = vpop.permute.xlu1 %1168 }
 0x14f   :  { %856 = vmax.xlane.f32.xlu1 %v2449_v29  ;;  %3054 = vst [vmem:[#allocation28_spill] sm:$0xff] %v2460_v36 }
 0x150   :  { %v2474_v49 = vpop.permute.xlu0 %1192 }
 0x151   :  { %3061 = vst [vmem:[#allocation35_spill] sm:$0xff] %v2474_v49 }
 0x152   :  { %v2464_v38 = vpop.permute.xlu1 %1171 }
 0x153   :  { %3056 = vst [vmem:[#allocation30_spill] sm:$0xff] %v2464_v38 }
 0x154   :  { %v2478_v55 = vpop.permute.xlu0 %1198 }
 0x155   :  { %vm1259_vm5 = vcmp.eq.s32.totalorder %v2246_v18, %v2478_v55 }
 0x156   :  { %v2468_v46 = vpop.permute.xlu1 %1177 }
 0x157   :  { %3058 = vst [vmem:[#allocation32_spill] sm:$0xff] %v2468_v46 }
 0x158   :  { %v2482_v58 = vpop.permute.xlu0 %1204 }
 0x159   :  { %3063 = vst [vmem:[#allocation37_spill] sm:$0xff] %v2482_v58 }
 0x15a   :  { %v2472_v48 = vpop.permute.xlu1 %1183 }
 0x15b   :  { %3060 = vst [vmem:[#allocation34_spill] sm:$0xff] %v2472_v48 }
 0x15c   :  { %v2486_v60 = vpop.permute.xlu0 %1210 }
 0x15d   :  { %3064 = vst [vmem:[#allocation38_spill] sm:$0xff] %v2486_v60 }
 0x15e   :  { %v2476_v52 = vpop.permute.xlu1 %1189 }
 0x15f   :  { %3062 = vst [vmem:[#allocation36_spill] sm:$0xff] %v2476_v52 }
 0x160   :  { %v2490_v62 = vpop.permute.xlu0 %1216 }
 0x161   :  { %3066 = vst [vmem:[#allocation40_spill] sm:$0xff] %v2490_v62 }
 0x162   :  { %v2480_v56 = vpop.permute.xlu1 %1195 }
 0x163   :  { %vm1258_vm2 = vcmp.eq.s32.totalorder %v2246_v18, %v2480_v56 }
 0x164   :  { %v2494_v7 = vpop.permute.xlu0 %1222 }
 0x165   :  { %3068 = vst [vmem:[#allocation42_spill] sm:$0xff] %v2494_v7 }
 0x166   :  { %v2484_v59 = vpop.permute.xlu1 %1201 }
 0x167   :  { %vm1260_vm7 = vcmp.eq.s32.totalorder %v2246_v18, %v2484_v59 }
 0x168   :  { %v2498_v11 = vpop.permute.xlu0 %1228 }
 0x169   :  { %3070 = vst [vmem:[#allocation44_spill] sm:$0xff] %v2498_v11 }
 0x16a   :  { %v2488_v61 = vpop.permute.xlu1 %1207 }
 0x16b   :  { %3065 = vst [vmem:[#allocation39_spill] sm:$0xff] %v2488_v61 }
 0x16c   :  { %v2502_v16 = vpop.permute.xlu0 %1234 }
 0x16d   :  { %3072 = vst [vmem:[#allocation46_spill] sm:$0xff] %v2502_v16 }
 0x16e   :  { %v2492_v3 = vpop.permute.xlu1 %1213 }
 0x16f   :  { %3067 = vst [vmem:[#allocation41_spill] sm:$0xff] %v2492_v3 }
 0x172   :  { %v2496_v9 = vpop.permute.xlu1 %1219 }
 0x173   :  { %3069 = vst [vmem:[#allocation43_spill] sm:$0xff] %v2496_v9 }
 0x176   :  { %v2500_v14 = vpop.permute.xlu1 %1225 }
 0x177   :  { %3071 = vst [vmem:[#allocation45_spill] sm:$0xff] %v2500_v14 }
 0x17a   :  { %v2504_v22 = vpop.permute.xlu1 %1231 }
 0x17b   :  { %3073 = vst [vmem:[#allocation47_spill] sm:$0xff] %v2504_v22 }
 0x19c   :  { %v2506_v23 = vpop.xlane.xlu0 %794 }
 0x19d   :  { %v858_v49 = vsub.f32 %v2258_v34, %v2506_v23 }
 0x19e   :  { %v2510_v47 = vpop.xlane.xlu1 %828 }
 0x19f   :  { %v890_v52 = vmul.f32 1.442695, %v858_v49  ;;  %v875_v22 = vsub.f32 %v2265_v43, %v2510_v47 }
 0x1a0   :  { %v2512_v48 = vpop.xlane.xlu0 %826 }
 0x1a1   :  { %1805 = vpow2.f32 %v890_v52  ;;  %v874_v11 = vsub.f32 %v2269_v44, %v2512_v48 }
 0x1a3   :  { %v922_v39 = vmul.f32 1.442695, %v874_v11  ;;  %v924_v11 = vmul.f32 1.442695, %v875_v22 }
 0x1a4   :  { %v2516_v14 = vpop.xlane.xlu1 %798  ;;  %v2518_v16 = vpop.xlane.xlu0 %796 }
 0x1a5   :  { %1807 = vpow2.f32 %v922_v39  ;;  %v860_v49 = vsub.f32 %v2277_v53, %v2516_v14  ;;  %v859_v7 = vsub.f32 %v2281_v54, %v2518_v16 }
 0x1a7   :  { %v894_v46 = vmul.f32 1.442695, %v860_v49  ;;  %v892_v52 = vmul.f32 1.442695, %v859_v7 }
 0x1a8   :  { %v2526_v9 = vpop.xlane.xlu1 %800  ;;  %v2528_v37 = vpop.xlane.xlu0 %830 }
 0x1a9   :  { %1809 = vpow2.f32 %v894_v46  ;;  %v861_v62 = vsub.f32 %v2289_v63, %v2526_v9  ;;  %v876_v39 = vsub.f32 %v2293_v0, %v2528_v37 }
 0x1aa   :  { %1811 = vpow2.f32 %v892_v52 }
 0x1ab   :  { %v1806_v38 = vpop.eup %1805  ;;  %v926_v3 = vmul.f32 1.442695, %v876_v39  ;;  %1813 = vpow2.f32 %v924_v11  ;;  %v896_v7 = vmul.f32 1.442695, %v861_v62 }
 0x1ac   :  { %v2534_v36 = vpop.xlane.xlu1 %832  ;;  %954 = vadd.xlane.f32.xlu0 %v1806_v38  ;;  %v2536_v49 = vpop.xlane.xlu0 %802 }
 0x1ad   :  { %v877_v22 = vsub.f32 %v2299_v5, %v2534_v36  ;;  %v862_v46 = vsub.f32 %v2305_v10, %v2536_v49  ;;  %1815 = vpow2.f32 %v926_v3 }
 0x1ae   :  { %1817 = vpow2.f32 %v896_v7 }
 0x1af   :  { %v1808_v60 = vpop.eup %1807  ;;  %v898_v30 = vmul.f32 1.442695, %v862_v46  ;;  %v928_v38 = vmul.f32 1.442695, %v877_v22 }
 0x1b0   :  { %v2542_v61 = vpop.xlane.xlu1 %804  ;;  %986 = vadd.xlane.f32.xlu0 %v1808_v60  ;;  %v2544_v52 = vpop.xlane.xlu0 %834 }
 0x1b1   :  { %3074 = vst [vmem:[#allocation48_spill] sm:$0xff] %v2542_v61  ;;  %v863_v11 = vsub.f32 %v2313_v20, %v2542_v61  ;;  %v878_v62 = vsub.f32 %v2317_v21, %v2544_v52  ;;  %1819 = vpow2.f32 %v898_v30 }
 0x1b2   :  { %1821 = vpow2.f32 %v928_v38 }
 0x1b3   :  { %v1810_v39 = vpop.eup %1809  ;;  %v930_v27 = vmul.f32 1.442695, %v878_v62  ;;  %v900_v60 = vmul.f32 1.442695, %v863_v11 }
 0x1b4   :  { %v1812_v58 = vpop.eup %1811  ;;  %v2550_v3 = vpop.xlane.xlu1 %836  ;;  %958 = vadd.xlane.f32.xlu0 %v1810_v39 }
 0x1b5   :  { %3075 = vst [vmem:[#allocation49_spill] sm:$0xff] %v2550_v3  ;;  %v2552_v46 = vpop.xlane.xlu0 %806  ;;  %v879_v7 = vsub.f32 %v2323_v26, %v2550_v3  ;;  %956 = vadd.xlane.f32.xlu1 %v1812_v58  ;;  %1823 = vpow2.f32 %v930_v27  ;;  %v1814_v20 = vpop.eup %1813 }
 0x1b6   :  { %v864_v22 = vsub.f32 %v2329_v32, %v2552_v46  ;;  %1825 = vpow2.f32 %v900_v60 }
 0x1b7   :  { %v1816_v21 = vpop.eup %1815  ;;  %v932_v39 = vmul.f32 1.442695, %v879_v7 }
 0x1b8   :  { %v902_v30 = vmul.f32 1.442695, %v864_v22  ;;  %v2558_v62 = vpop.xlane.xlu1 %808  ;;  %990 = vadd.xlane.f32.xlu0 %v1816_v21  ;;  %v1818_v11 = vpop.eup %1817 }
 0x1b9   :  { %v2560_v61 = vpop.xlane.xlu0 %838  ;;  %v865_v38 = vsub.f32 %v2337_v42, %v2558_v62  ;;  %988 = vadd.xlane.f32.xlu1 %v1814_v20 }
 0x1ba   :  { %v880_v58 = vsub.f32 %v2341_v45, %v2560_v61  ;;  %1827 = vpow2.f32 %v902_v30 }
 0x1bb   :  { %v1820_v26 = vpop.eup %1819  ;;  %1829 = vpow2.f32 %v932_v39  ;;  %v904_v32 = vmul.f32 1.442695, %v865_v38 }
 0x1bc   :  { %v934_v27 = vmul.f32 1.442695, %v880_v58  ;;  %v2566_v22 = vpop.xlane.xlu1 %840  ;;  %962 = vadd.xlane.f32.xlu0 %v1820_v26  ;;  %v1822_v21 = vpop.eup %1821 }
 0x1bd   :  { %3076 = vst [vmem:[#allocation50_spill] sm:$0xff] %v2566_v22  ;;  %v2568_v3 = vpop.xlane.xlu0 %810  ;;  %v881_v60 = vsub.f32 %v2347_v50, %v2566_v22  ;;  %960 = vadd.xlane.f32.xlu1 %v1818_v11 }
 0x1be   :  { %v866_v20 = vsub.f32 %v2353_v57, %v2568_v3  ;;  %1831 = vpow2.f32 %v934_v27 }
 0x1bf   :  { %v1824_v30 = vpop.eup %1823  ;;  %1833 = vpow2.f32 %v904_v32  ;;  %v936_v45 = vmul.f32 1.442695, %v881_v60 }
 0x1c0   :  { %v906_v7 = vmul.f32 1.442695, %v866_v20  ;;  %v2574_v58 = vpop.xlane.xlu1 %812  ;;  %994 = vadd.xlane.f32.xlu0 %v1824_v30  ;;  %v1826_v38 = vpop.eup %1825 }
 0x1c1   :  { %v2576_v42 = vpop.xlane.xlu0 %842  ;;  %v867_v39 = vsub.f32 %v2361_v4, %v2574_v58  ;;  %992 = vadd.xlane.f32.xlu1 %v1822_v21 }
 0x1c2   :  { %v882_v26 = vsub.f32 %v2365_v6, %v2576_v42  ;;  %1835 = vpow2.f32 %v906_v7 }
 0x1c3   :  { %1837 = vpow2.f32 %v936_v45  ;;  %v908_v22 = vmul.f32 1.442695, %v867_v39 }
 0x1c4   :  { %v938_v11 = vmul.f32 1.442695, %v882_v26  ;;  %v1828_v27 = vpop.eup %1827  ;;  %v2582_v20 = vpop.xlane.xlu1 %844 }
 0x1c5   :  { %3077 = vst [vmem:[#allocation51_spill] sm:$0xff] %v2582_v20  ;;  %v2584_v50 = vpop.xlane.xlu0 %814  ;;  %v883_v32 = vsub.f32 %v2371_v12, %v2582_v20  ;;  %964 = vadd.xlane.f32.xlu1 %v1826_v38  ;;  %966 = vadd.xlane.f32.xlu0 %v1828_v27  ;;  %v1830_v21 = vpop.eup %1829 }
 0x1c6   :  { %v868_v60 = vsub.f32 %v2379_v19, %v2584_v50  ;;  %1839 = vpow2.f32 %v938_v11 }
 0x1c7   :  { %1841 = vpow2.f32 %v908_v22  ;;  %v940_v6 = vmul.f32 1.442695, %v883_v32 }
 0x1c8   :  { %v910_v7 = vmul.f32 1.442695, %v868_v60  ;;  %v1832_v30 = vpop.eup %1831  ;;  %v2590_v26 = vpop.xlane.xlu1 %816 }
 0x1c9   :  { %v2592_v4 = vpop.xlane.xlu0 %846  ;;  %v869_v45 = vsub.f32 %v2387_v33, %v2590_v26  ;;  %996 = vadd.xlane.f32.xlu1 %v1830_v21  ;;  %998 = vadd.xlane.f32.xlu0 %v1832_v30  ;;  %v1834_v38 = vpop.eup %1833 }
 0x1ca   :  { %v884_v39 = vsub.f32 %v2391_v35, %v2592_v4  ;;  %1843 = vpow2.f32 %v910_v7 }
 0x1cb   :  { %1845 = vpow2.f32 %v940_v6  ;;  %v912_v20 = vmul.f32 1.442695, %v869_v45 }
 0x1cc   :  { %v942_v11 = vmul.f32 1.442695, %v884_v39  ;;  %v1836_v27 = vpop.eup %1835  ;;  %v2598_v60 = vpop.xlane.xlu1 %848 }
 0x1cd   :  { %v2600_v12 = vpop.xlane.xlu0 %818  ;;  %v885_v22 = vsub.f32 %v2397_v40, %v2598_v60  ;;  %968 = vadd.xlane.f32.xlu1 %v1834_v38  ;;  %970 = vadd.xlane.f32.xlu0 %v1836_v27  ;;  %v1838_v21 = vpop.eup %1837 }
 0x1ce   :  { %v870_v32 = vsub.f32 %v2405_v51, %v2600_v12  ;;  %1847 = vpow2.f32 %v942_v11 }
 0x1cf   :  { %1849 = vpow2.f32 %v912_v20  ;;  %v944_v35 = vmul.f32 1.442695, %v885_v22 }
 0x1d0   :  { %v914_v7 = vmul.f32 1.442695, %v870_v32  ;;  %v1840_v30 = vpop.eup %1839  ;;  %v2606_v39 = vpop.xlane.xlu1 %820 }
 0x1d1   :  { %v2608_v33 = vpop.xlane.xlu0 %850  ;;  %v871_v6 = vsub.f32 %v2413_v1, %v2606_v39  ;;  %1000 = vadd.xlane.f32.xlu1 %v1838_v21  ;;  %1002 = vadd.xlane.f32.xlu0 %v1840_v30  ;;  %v1842_v38 = vpop.eup %1841 }
 0x1d2   :  { %v886_v45 = vsub.f32 %v2417_v2, %v2608_v33  ;;  %1851 = vpow2.f32 %v914_v7 }
 0x1d3   :  { %1853 = vpow2.f32 %v944_v35  ;;  %v916_v51 = vmul.f32 1.442695, %v871_v6 }
 0x1d4   :  { %v946_v11 = vmul.f32 1.442695, %v886_v45  ;;  %v1844_v27 = vpop.eup %1843  ;;  %v2614_v32 = vpop.xlane.xlu1 %852 }
 0x1d5   :  { %v2616_v40 = vpop.xlane.xlu0 %822  ;;  %v887_v20 = vsub.f32 %v2425_v13, %v2614_v32  ;;  %972 = vadd.xlane.f32.xlu1 %v1842_v38  ;;  %974 = vadd.xlane.f32.xlu0 %v1844_v27  ;;  %v1846_v21 = vpop.eup %1845 }
 0x1d6   :  { %v872_v22 = vsub.f32 %v2431_v17, %v2616_v40  ;;  %1855 = vpow2.f32 %v946_v11 }
 0x1d7   :  { %1857 = vpow2.f32 %v916_v51  ;;  %v948_v2 = vmul.f32 1.442695, %v887_v20 }
 0x1d8   :  { %v918_v7 = vmul.f32 1.442695, %v872_v22  ;;  %v1848_v30 = vpop.eup %1847  ;;  %v2622_v45 = vpop.xlane.xlu1 %824 }
 0x1d9   :  { %v2624_v1 = vpop.xlane.xlu0 %854  ;;  %1004 = vadd.xlane.f32.xlu1 %v1846_v21  ;;  %1006 = vadd.xlane.f32.xlu0 %v1848_v30  ;;  %v873_v6 = vsub.f32 %v2441_v25, %v2622_v45  ;;  %v1850_v38 = vpop.eup %1849 }
 0x1da   :  { %v888_v35 = vsub.f32 %v2445_v28, %v2624_v1  ;;  %1859 = vpow2.f32 %v918_v7 }
 0x1db   :  { %1861 = vpow2.f32 %v948_v2  ;;  %v920_v13 = vmul.f32 1.442695, %v873_v6 }
 0x1dc   :  { %v950_v11 = vmul.f32 1.442695, %v888_v35  ;;  %v1852_v27 = vpop.eup %1851  ;;  %v2630_v22 = vpop.xlane.xlu1 %856 }
 0x1dd   :  { %976 = vadd.xlane.f32.xlu1 %v1850_v38  ;;  %978 = vadd.xlane.f32.xlu0 %v1852_v27  ;;  %v889_v51 = vsub.f32 %v2449_v29, %v2630_v22  ;;  %v1854_v20 = vpop.eup %1853 }
 0x1de   :  { %1863 = vpow2.f32 %v950_v11  ;;  %v2637_v11 = vld [vmem:[%s3007_s3 + $0xf8] sm:$0xff] }
 0x1df   :  { %1865 = vpow2.f32 %v920_v13  ;;  %v952_v7 = vmul.f32 1.442695, %v889_v51  ;;  %3078 = vst [vmem:[#allocation52_spill] sm:$0xff] %v2637_v11  ;;  %v2643_v13 = vld [vmem:[%s3007_s3 + $0xf0] sm:$0xff] }
 0x1e0   :  { %v1856_v21 = vpop.eup %1855  ;;  %3079 = vst [vmem:[#allocation53_spill] sm:$0xff] %v2643_v13 }
 0x1e1   :  { %1008 = vadd.xlane.f32.xlu1 %v1854_v20  ;;  %1010 = vadd.xlane.f32.xlu0 %v1856_v21  ;;  %v1858_v30 = vpop.eup %1857  ;;  %1867 = vpow2.f32 %v952_v7 }
 0x1e4   :  { %v1860_v25 = vpop.eup %1859 }
 0x1e5   :  { %980 = vadd.xlane.f32.xlu1 %v1858_v30  ;;  %982 = vadd.xlane.f32.xlu0 %v1860_v25  ;;  %v1862_v35 = vpop.eup %1861 }
 0x1e8   :  { %v1864_v2 = vpop.eup %1863 }
 0x1e9   :  { %1012 = vadd.xlane.f32.xlu1 %v1862_v35  ;;  %1014 = vadd.xlane.f32.xlu0 %v1864_v2  ;;  %v1866_v6 = vpop.eup %1865 }
 0x1eb   :  { %v1868_v38 = vpop.eup %1867 }
 0x1ed   :  { %984 = vadd.xlane.f32.xlu1 %v1866_v6 }
 0x1f1   :  { %1016 = vadd.xlane.f32.xlu1 %v1868_v38 }
 0x1ff   :  { %1240 = vperm.xlu0 %1739, %v2637_v11  }
 0x202   :  { %1237 = vperm.xlu1 %1740, %v2643_v13  }
 0x239   :  { %v955_v25 = vpop.xlane.xlu0 %954 }
 0x23a   :  { %1869 = vlog2.f32 %v955_v25 }
 0x23d   :  { %v987_v27 = vpop.xlane.xlu0 %986 }
 0x23e   :  { %1871 = vlog2.f32 %v987_v27 }
 0x241   :  { %v959_v51 = vpop.xlane.xlu0 %958 }
 0x242   :  { %v957_v20 = vpop.xlane.xlu1 %956  ;;  %1873 = vlog2.f32 %v959_v51 }
 0x243   :  { %1875 = vlog2.f32 %v957_v20 }
 0x244   :  { %v1870_v21 = vpop.eup %1869 }
 0x245   :  { %v1019_v7 = vmul.f32 0.6931472, %v1870_v21  ;;  %v991_v35 = vpop.xlane.xlu0 %990 }
 0x246   :  { %v989_v30 = vpop.xlane.xlu1 %988 }
 0x247   :  { %v1082_v2 = vadd.f32 %v1019_v7, %v2506_v23  ;;  %1877 = vlog2.f32 %v989_v30 }
 0x248   :  { %v1872_v6 = vpop.eup %1871  ;;  %1879 = vlog2.f32 %v991_v35 }
 0x249   :  { %v1051_v38 = vmul.f32 0.6931472, %v1872_v6  ;;  %v1274_v11 = vsub.f32 %v2258_v34, %v1082_v2  ;;  %v963_v27 = vpop.xlane.xlu0 %962 }
 0x24a   :  { %v961_v25 = vpop.xlane.xlu1 %960 }
 0x24b   :  { %1881 = vlog2.f32 %v961_v25  ;;  %v1306_v51 = vsel %vm1242_vm1, %v1274_v11, 0.0  ;;  %v1098_v20 = vadd.f32 %v1051_v38, %v2512_v48 }
 0x24c   :  { %v1874_v21 = vpop.eup %1873  ;;  %1883 = vlog2.f32 %v963_v27  ;;  %1338 = vadd.xlane.f32.xlu1 %v1306_v51 }
 0x24d   :  { %v1876_v13 = vpop.eup %1875  ;;  %v1023_v23 = vmul.f32 0.6931472, %v1874_v21  ;;  %v1290_v7 = vsub.f32 %v2269_v44, %v1098_v20  ;;  %v995_v6 = vpop.xlane.xlu0 %994 }
 0x24e   :  { %v1021_v30 = vmul.f32 0.6931472, %v1876_v13  ;;  %v993_v35 = vpop.xlane.xlu1 %992 }
 0x24f   :  { %1885 = vlog2.f32 %v993_v35  ;;  %v1322_v34 = vsel %vm1258_vm2, %v1290_v7, 0.0  ;;  %v1084_v31 = vadd.f32 %v1023_v23, %v2516_v14 }
 0x250   :  { %1887 = vlog2.f32 %v995_v6  ;;  %1370 = vadd.xlane.f32.xlu0 %v1322_v34  ;;  %v1083_v48 = vadd.f32 %v1021_v30, %v2518_v16 }
 0x251   :  { %v1878_v11 = vpop.eup %1877  ;;  %v1276_v56 = vsub.f32 %v2277_v53, %v1084_v31 }
 0x252   :  { %v1880_v2 = vpop.eup %1879  ;;  %v1053_v38 = vmul.f32 0.6931472, %v1878_v11  ;;  %v965_v25 = vpop.xlane.xlu1 %964  ;;  %v1275_v44 = vsub.f32 %v2281_v54, %v1083_v48 }
 0x253   :  { %v967_v27 = vpop.xlane.xlu0 %966  ;;  %v1055_v13 = vmul.f32 0.6931472, %v1880_v2  ;;  %1889 = vlog2.f32 %v965_v25  ;;  %v1308_v15 = vsel %vm1244_vm4, %v1276_v56, 0.0  ;;  %v3081_v56 = vld [vmem:[#allocation48_spill] sm:$0xff] }
 0x254   :  { %v1099_v14 = vadd.f32 %v1053_v38, %v2510_v47  ;;  %1891 = vlog2.f32 %v967_v27  ;;  %v1307_v51 = vsel %vm1243_vm3, %v1275_v44, 0.0 }
 0x255   :  { %v1882_v20 = vpop.eup %1881  ;;  %1340 = vadd.xlane.f32.xlu0 %v1307_v51  ;;  %v1100_v16 = vadd.f32 %v1055_v13, %v2528_v37  ;;  %v3082_v51 = vld [vmem:[#allocation9_spill] sm:$0xff] }
 0x256   :  { %v1884_v21 = vpop.eup %1883  ;;  %v1025_v23 = vmul.f32 0.6931472, %v1882_v20  ;;  %v997_v7 = vpop.xlane.xlu1 %996  ;;  %v1291_v54 = vsub.f32 %v2265_v43, %v1099_v14 }
 0x257   :  { %v999_v30 = vpop.xlane.xlu0 %998  ;;  %v1027_v53 = vmul.f32 0.6931472, %v1884_v21  ;;  %1893 = vlog2.f32 %v997_v7  ;;  %v1292_v37 = vsub.f32 %v2293_v0, %v1100_v16 }
 0x258   :  { %v1085_v47 = vadd.f32 %v1025_v23, %v2526_v9  ;;  %1895 = vlog2.f32 %v999_v30  ;;  %v1323_v35 = vsel %vm1259_vm5, %v1291_v54, 0.0  ;;  %v3083_v23 = vld [vmem:[#allocation26_spill] sm:$0xff]  ;;  %v3084_v54 = vld [vmem:[#allocation8_spill] sm:$0xff] }
 0x259   :  { %v1886_v6 = vpop.eup %1885  ;;  %v1086_v34 = vadd.f32 %v1027_v53, %v2536_v49  ;;  %1372 = vadd.xlane.f32.xlu1 %v1323_v35  ;;  %1342 = vadd.xlane.f32.xlu0 %v1308_v15  ;;  %v1324_v2 = vsel %vm1260_vm7, %v1292_v37, 0.0  ;;  %vm1247_vm10 = vcmp.eq.s32.totalorder %v2246_v18, %v3083_v23  ;;  %v3085_v15 = vld [vmem:[#allocation39_spill] sm:$0xff] }
 0x25a   :  { %v1888_v43 = vpop.eup %1887  ;;  %v1057_v41 = vmul.f32 0.6931472, %v1886_v6  ;;  %v969_v55 = vpop.xlane.xlu1 %968  ;;  %v1277_v48 = vsub.f32 %v2289_v63, %v1085_v47  ;;  %vm1262_vm11 = vcmp.eq.s32.totalorder %v2246_v18, %v3085_v15  ;;  %v3086_v35 = vld [vmem:[#allocation11_spill] sm:$0xff]  ;;  %v3087_v6 = vld [vmem:[#allocation49_spill] sm:$0xff] }
 0x25b   :  { %v971_v31 = vpop.xlane.xlu0 %970  ;;  %v1059_v11 = vmul.f32 0.6931472, %v1888_v43  ;;  %1897 = vlog2.f32 %v969_v55  ;;  %v1278_v0 = vsub.f32 %v2305_v10, %v1086_v34  ;;  %v3080_v10 = vld [vmem:[#allocation37_spill] sm:$0xff] }
 0x25c   :  { %v1101_v9 = vadd.f32 %v1057_v41, %v2534_v36  ;;  %1899 = vlog2.f32 %v971_v31  ;;  %v1309_v49 = vsel %vm1245_vm6, %v1277_v48, 0.0  ;;  %vm1261_vm9 = vcmp.eq.s32.totalorder %v2246_v18, %v3080_v10  ;;  %v3088_v48 = vld [vmem:[#allocation27_spill] sm:$0xff] }
 0x25d   :  { %v1890_v38 = vpop.eup %1889  ;;  %v1102_v8 = vadd.f32 %v1059_v11, %v2544_v52  ;;  %1344 = vadd.xlane.f32.xlu1 %v1309_v49  ;;  %1374 = vadd.xlane.f32.xlu0 %v1324_v2  ;;  %v1310_v13 = vsel %vm1246_vm8, %v1278_v0, 0.0  ;;  %vm1248_vm12 = vcmp.eq.s32.totalorder %v2246_v18, %v3088_v48  ;;  %v3089_v49 = vld [vmem:[#allocation10_spill] sm:$0xff] }
 0x25e   :  { %v1892_v25 = vpop.eup %1891  ;;  %v1029_v63 = vmul.f32 0.6931472, %v1890_v38  ;;  %v1001_v27 = vpop.xlane.xlu1 %1000  ;;  %v1293_v59 = vsub.f32 %v2299_v5, %v1101_v9  ;;  %v3090_v38 = vld [vmem:[#allocation38_spill] sm:$0xff] }
 0x25f   :  { %v1003_v44 = vpop.xlane.xlu0 %1002  ;;  %v1031_v36 = vmul.f32 0.6931472, %v1892_v25  ;;  %1901 = vlog2.f32 %v1001_v27  ;;  %v1294_v20 = vsub.f32 %v3082_v51, %v1102_v8  ;;  %vm1263_vm13 = vcmp.eq.s32.totalorder %v2246_v18, %v3090_v38  ;;  %v3091_v27 = vld [vmem:[#allocation13_spill] sm:$0xff]  ;;  %v3093_v51 = vld [vmem:[#allocation12_spill] sm:$0xff]  ;;  %v3101_v38 = vld [vmem:[#allocation15_spill] sm:$0xff] }
 0x260   :  { %v1087_v14 = vadd.f32 %v1029_v63, %v3081_v56  ;;  %1903 = vlog2.f32 %v1003_v44  ;;  %v1325_v52 = vsel %vm1261_vm9, %v1293_v59, 0.0 }
 0x261   :  { %v1894_v16 = vpop.eup %1893  ;;  %v1088_v24 = vadd.f32 %v1031_v36, %v2552_v46  ;;  %1376 = vadd.xlane.f32.xlu1 %v1325_v52  ;;  %1346 = vadd.xlane.f32.xlu0 %v1310_v13  ;;  %v1326_v43 = vsel %vm1262_vm11, %v1294_v20, 0.0  ;;  %v3092_v13 = vld [vmem:[#allocation28_spill] sm:$0xff] }
 0x262   :  { %v1896_v21 = vpop.eup %1895  ;;  %v1061_v5 = vmul.f32 0.6931472, %v1894_v16  ;;  %v973_v7 = vpop.xlane.xlu1 %972  ;;  %v1279_v53 = vsub.f32 %v3084_v54, %v1087_v14  ;;  %vm1249_vm14 = vcmp.eq.s32.totalorder %v2246_v18, %v3092_v13  ;;  %v3094_v16 = vld [vmem:[#allocation41_spill] sm:$0xff]  ;;  %v3104_v13 = vld [vmem:[#allocation32_spill] sm:$0xff] }
 0x263   :  { %v975_v30 = vpop.xlane.xlu0 %974  ;;  %v1063_v47 = vmul.f32 0.6931472, %v1896_v21  ;;  %1905 = vlog2.f32 %v973_v7  ;;  %v1280_v37 = vsub.f32 %v3086_v35, %v1088_v24  ;;  %vm1264_vm15 = vcmp.eq.s32.totalorder %v2246_v18, %v3094_v16  ;;  %v3095_v21 = vld [vmem:[#allocation50_spill] sm:$0xff] }
 0x264   :  { %v1103_v46 = vadd.f32 %v1061_v5, %v3087_v6  ;;  %1907 = vlog2.f32 %v975_v30  ;;  %v1311_v34 = vsel %vm1247_vm10, %v1279_v53, 0.0  ;;  %v3096_v53 = vld [vmem:[#allocation30_spill] sm:$0xff]  ;;  %vm1252_vm4 = vcmp.eq.s32.totalorder %v2246_v18, %v3104_v13 }
 0x265   :  { %v1898_v41 = vpop.eup %1897  ;;  %v1104_v55 = vadd.f32 %v1063_v47, %v2560_v61  ;;  %1348 = vadd.xlane.f32.xlu1 %v1311_v34  ;;  %1378 = vadd.xlane.f32.xlu0 %v1326_v43  ;;  %v1312_v25 = vsel %vm1248_vm12, %v1280_v37, 0.0  ;;  %vm1250_vm0 = vcmp.eq.s32.totalorder %v2246_v18, %v3096_v53  ;;  %v3097_v37 = vld [vmem:[#allocation14_spill] sm:$0xff] }
 0x266   :  { %v1900_v31 = vpop.eup %1899  ;;  %v1033_v11 = vmul.f32 0.6931472, %v1898_v41  ;;  %v1005_v0 = vpop.xlane.xlu1 %1004  ;;  %v1295_v2 = vsub.f32 %v3089_v49, %v1103_v46  ;;  %v3099_v41 = vld [vmem:[#allocation16_spill] sm:$0xff]  ;;  %v3108_v53 = vld [vmem:[#allocation18_spill] sm:$0xff] }
 0x267   :  { %v1007_v9 = vpop.xlane.xlu0 %1006  ;;  %v1035_v8 = vmul.f32 0.6931472, %v1900_v31  ;;  %1909 = vlog2.f32 %v1005_v0  ;;  %v1296_v44 = vsub.f32 %v3091_v27, %v1104_v55  ;;  %v3100_v0 = vld [vmem:[#allocation29_spill] sm:$0xff] }
 0x268   :  { %v1089_v63 = vadd.f32 %v1033_v11, %v2558_v62  ;;  %1911 = vlog2.f32 %v1007_v9  ;;  %v1327_v61 = vsel %vm1263_vm13, %v1295_v2, 0.0  ;;  %vm1251_vm2 = vcmp.eq.s32.totalorder %v2246_v18, %v3100_v0  ;;  %v3114_v0 = vld [vmem:[#allocation44_spill] sm:$0xff] }
 0x269   :  { %v1902_v59 = vpop.eup %1901  ;;  %v1090_v10 = vadd.f32 %v1035_v8, %v2568_v3  ;;  %1380 = vadd.xlane.f32.xlu1 %v1327_v61  ;;  %1350 = vadd.xlane.f32.xlu0 %v1312_v25  ;;  %v1328_v5 = vsel %vm1264_vm15, %v1296_v44, 0.0  ;;  %v3102_v25 = vld [vmem:[#allocation43_spill] sm:$0xff]  ;;  %vm1269_vm9 = vcmp.eq.s32.totalorder %v2246_v18, %v3114_v0 }
 0x26a   :  { %v1904_v36 = vpop.eup %1903  ;;  %v1065_v56 = vmul.f32 0.6931472, %v1902_v59  ;;  %v977_v14 = vpop.xlane.xlu1 %976  ;;  %v1281_v20 = vsub.f32 %v3093_v51, %v1089_v63  ;;  %vm1266_vm3 = vcmp.eq.s32.totalorder %v2246_v18, %v3102_v25  ;;  %v3103_v61 = vld [vmem:[#allocation51_spill] sm:$0xff]  ;;  %v3105_v51 = vld [vmem:[#allocation17_spill] sm:$0xff] }
 0x26b   :  { %v979_v52 = vpop.xlane.xlu0 %978  ;;  %v1067_v62 = vmul.f32 0.6931472, %v1904_v36  ;;  %1913 = vlog2.f32 %v977_v14  ;;  %v1282_v24 = vsub.f32 %v2353_v57, %v1090_v10  ;;  %v3098_v57 = vld [vmem:[#allocation40_spill] sm:$0xff] }
 0x26c   :  { %v1105_v3 = vadd.f32 %v1065_v56, %v3095_v21  ;;  %1915 = vlog2.f32 %v979_v52  ;;  %v1313_v23 = vsel %vm1249_vm14, %v1281_v20, 0.0  ;;  %vm1265_vm1 = vcmp.eq.s32.totalorder %v2246_v18, %v3098_v57  ;;  %v3107_v21 = vld [vmem:[#allocation19_spill] sm:$0xff] }
 0x26d   :  { %v1906_v7 = vpop.eup %1905  ;;  %v1106_v30 = vadd.f32 %v1067_v62, %v2576_v42  ;;  %1352 = vadd.xlane.f32.xlu1 %v1313_v23  ;;  %1382 = vadd.xlane.f32.xlu0 %v1328_v5  ;;  %v1314_v34 = vsel %vm1250_vm0, %v1282_v24, 0.0 }
 0x26e   :  { %v1908_v54 = vpop.eup %1907  ;;  %v1037_v15 = vmul.f32 0.6931472, %v1906_v7  ;;  %v1009_v47 = vpop.xlane.xlu1 %1008  ;;  %v1297_v6 = vsub.f32 %v3097_v37, %v1105_v3 }
 0x26f   :  { %v1011_v35 = vpop.xlane.xlu0 %1010  ;;  %v1039_v46 = vmul.f32 0.6931472, %v1908_v54  ;;  %1917 = vlog2.f32 %v1009_v47  ;;  %v1298_v55 = vsub.f32 %v3099_v41, %v1106_v30  ;;  %v3109_v47 = vld [vmem:[#allocation31_spill] sm:$0xff] }
 0x270   :  { %v1091_v43 = vadd.f32 %v1037_v15, %v2574_v58  ;;  %1919 = vlog2.f32 %v1011_v35  ;;  %v1329_v42 = vsel %vm1265_vm1, %v1297_v6, 0.0  ;;  %vm1253_vm6 = vcmp.eq.s32.totalorder %v2246_v18, %v3109_v47  ;;  %v3110_v35 = vld [vmem:[#allocation45_spill] sm:$0xff] }
 0x271   :  { %v1910_v31 = vpop.eup %1909  ;;  %v1092_v48 = vadd.f32 %v1039_v46, %v2584_v50  ;;  %1384 = vadd.xlane.f32.xlu1 %v1329_v42  ;;  %1354 = vadd.xlane.f32.xlu0 %v1314_v34  ;;  %v1330_v44 = vsel %vm1266_vm3, %v1298_v55, 0.0  ;;  %vm1268_vm7 = vcmp.eq.s32.totalorder %v2246_v18, %v3110_v35 }
 0x272   :  { %v1912_v11 = vpop.eup %1911  ;;  %v1069_v9 = vmul.f32 0.6931472, %v1910_v31  ;;  %v981_v49 = vpop.xlane.xlu1 %980  ;;  %v1283_v8 = vsub.f32 %v3101_v38, %v1091_v43  ;;  %v3112_v31 = vld [vmem:[#allocation20_spill] sm:$0xff] }
 0x273   :  { %v983_v2 = vpop.xlane.xlu0 %982  ;;  %v1071_v58 = vmul.f32 0.6931472, %v1912_v11  ;;  %1921 = vlog2.f32 %v981_v49  ;;  %v1284_v63 = vsub.f32 %v2379_v19, %v1092_v48  ;;  %v3106_v19 = vld [vmem:[#allocation42_spill] sm:$0xff] }
 0x274   :  { %v1107_v50 = vadd.f32 %v1069_v9, %v3103_v61  ;;  %1923 = vlog2.f32 %v983_v2  ;;  %v1315_v27 = vsel %vm1251_vm2, %v1283_v8, 0.0  ;;  %vm1267_vm5 = vcmp.eq.s32.totalorder %v2246_v18, %v3106_v19  ;;  %v3113_v11 = vld [vmem:[#allocation34_spill] sm:$0xff] }
 0x275   :  { %v1914_v59 = vpop.eup %1913  ;;  %v1108_v10 = vadd.f32 %v1071_v58, %v2592_v4  ;;  %1356 = vadd.xlane.f32.xlu1 %v1315_v27  ;;  %1386 = vadd.xlane.f32.xlu0 %v1330_v44  ;;  %v1316_v62 = vsel %vm1252_vm4, %v1284_v63, 0.0  ;;  %vm1254_vm8 = vcmp.eq.s32.totalorder %v2246_v18, %v3113_v11  ;;  %v3116_v61 = vld [vmem:[#allocation22_spill] sm:$0xff]  ;;  %v3117_v27 = vld [vmem:[#allocation33_spill] sm:$0xff]  ;;  %v3118_v44 = vld [vmem:[#allocation47_spill] sm:$0xff] }
 0x276   :  { %v1916_v36 = vpop.eup %1915  ;;  %v1041_v56 = vmul.f32 0.6931472, %v1914_v59  ;;  %v1013_v14 = vpop.xlane.xlu1 %1012  ;;  %v1299_v20 = vsub.f32 %v3105_v51, %v1107_v50  ;;  %vm1255_vm10 = vcmp.eq.s32.totalorder %v2246_v18, %v3117_v27  ;;  %vm1270_vm11 = vcmp.eq.s32.totalorder %v2246_v18, %v3118_v44  ;;  %v3121_v19 = vld [vmem:[#allocation46_spill] sm:$0xff] }
 0x277   :  { %v1015_v52 = vpop.xlane.xlu0 %1014  ;;  %v1043_v16 = vmul.f32 0.6931472, %v1916_v36  ;;  %1925 = vlog2.f32 %v1013_v14  ;;  %v1300_v3 = vsub.f32 %v3107_v21, %v1108_v10  ;;  %vm1271_vm13 = vcmp.eq.s32.totalorder %v2246_v18, %v3121_v19  ;;  %v3122_v21 = vld [vmem:[#allocation25_spill] sm:$0xff] }
 0x278   :  { %v1093_v24 = vadd.f32 %v1041_v56, %v2590_v26  ;;  %1927 = vlog2.f32 %v1015_v52  ;;  %v1331_v4 = vsel %vm1267_vm5, %v1299_v20, 0.0  ;;  %v3119_v52 = vld [vmem:[#allocation24_spill] sm:$0xff] }
 0x279   :  { %v1918_v23 = vpop.eup %1917  ;;  %v1094_v5 = vadd.f32 %v1043_v16, %v2600_v12  ;;  %1388 = vadd.xlane.f32.xlu1 %v1331_v4  ;;  %1358 = vadd.xlane.f32.xlu0 %v1316_v62  ;;  %v1332_v57 = vsel %vm1268_vm7, %v1300_v3, 0.0  ;;  %v3111_v12 = vld [vmem:[#allocation21_spill] sm:$0xff]  ;;  %v3120_v20 = vld [vmem:[#allocation36_spill] sm:$0xff] }
 0x27a   :  { %v1920_v7 = vpop.eup %1919  ;;  %v1073_v30 = vmul.f32 0.6931472, %v1918_v23  ;;  %v985_v54 = vpop.xlane.xlu1 %984  ;;  %v1285_v15 = vsub.f32 %v3108_v53, %v1093_v24  ;;  %vm1256_vm12 = vcmp.eq.s32.totalorder %v2246_v18, %v3120_v20  ;;  %v3123_v23 = vld [vmem:[#allocation35_spill] sm:$0xff] }
 0x27b   :  { %v1075_v26 = vmul.f32 0.6931472, %v1920_v7  ;;  %1929 = vlog2.f32 %v985_v54  ;;  %v1286_v46 = vsub.f32 %v3111_v12, %v1094_v5  ;;  %vm1257_vm14 = vcmp.eq.s32.totalorder %v2246_v18, %v3123_v23 }
 0x27c   :  { %v1109_v37 = vadd.f32 %v1073_v30, %v2598_v60  ;;  %v1317_v6 = vsel %vm1253_vm6, %v1285_v15, 0.0 }
 0x27d   :  { %v1922_v34 = vpop.eup %1921  ;;  %v1110_v43 = vadd.f32 %v1075_v26, %v2608_v33  ;;  %1360 = vadd.xlane.f32.xlu1 %v1317_v6  ;;  %1390 = vadd.xlane.f32.xlu0 %v1332_v57  ;;  %v1318_v2 = vsel %vm1254_vm8, %v1286_v46, 0.0  ;;  %v3115_v33 = vld [vmem:[#allocation23_spill] sm:$0xff] }
 0x27e   :  { %v1924_v42 = vpop.eup %1923  ;;  %v1045_v41 = vmul.f32 0.6931472, %v1922_v34  ;;  %v1017_v55 = vpop.xlane.xlu1 %1016  ;;  %v1301_v48 = vsub.f32 %v3112_v31, %v1109_v37 }
 0x27f   :  { %v1047_v60 = vmul.f32 0.6931472, %v1924_v42  ;;  %1931 = vlog2.f32 %v1017_v55  ;;  %v1302_v38 = vsub.f32 %v3115_v33, %v1110_v43  ;;  %v1241_v7 = vpop.permute.xlu0 %1240 }
 0x280   :  { %v1095_v9 = vadd.f32 %v1045_v41, %v2606_v39  ;;  %v1333_v49 = vsel %vm1269_vm9, %v1301_v48, 0.0  ;;  %vm1273_vm0 = vcmp.eq.s32.totalorder %v2246_v18, %v1241_v7 }
 0x281   :  { %v1926_v8 = vpop.eup %1925  ;;  %v1096_v25 = vadd.f32 %v1047_v60, %v2616_v40  ;;  %1392 = vadd.xlane.f32.xlu1 %v1333_v49  ;;  %1362 = vadd.xlane.f32.xlu0 %v1318_v2  ;;  %v1334_v36 = vsel %vm1270_vm11, %v1302_v38, 0.0 }
 0x282   :  { %v1928_v58 = vpop.eup %1927  ;;  %v1077_v63 = vmul.f32 0.6931472, %v1926_v8  ;;  %v1287_v50 = vsub.f32 %v3116_v61, %v1095_v9  ;;  %v1238_v16 = vpop.permute.xlu1 %1237 }
 0x283   :  { %v1079_v39 = vmul.f32 0.6931472, %v1928_v58  ;;  %v1288_v13 = vsub.f32 %v2431_v17, %v1096_v25  ;;  %vm1272_vm15 = vcmp.eq.s32.totalorder %v2246_v18, %v1238_v16 }
 0x284   :  { %v1111_v59 = vadd.f32 %v1077_v63, %v2614_v32  ;;  %v1319_v10 = vsel %vm1255_vm10, %v1287_v50, 0.0 }
 0x285   :  { %v1930_v40 = vpop.eup %1929  ;;  %v1112_v56 = vadd.f32 %v1079_v39, %v2624_v1  ;;  %1364 = vadd.xlane.f32.xlu1 %v1319_v10  ;;  %1394 = vadd.xlane.f32.xlu0 %v1334_v36  ;;  %v1320_v24 = vsel %vm1256_vm12, %v1288_v13, 0.0 }
 0x286   :  { %v1049_v14 = vmul.f32 0.6931472, %v1930_v40  ;;  %v1303_v51 = vsub.f32 %v3119_v52, %v1111_v59 }
 0x287   :  { %v1304_v62 = vsub.f32 %v2445_v28, %v1112_v56 }
 0x288   :  { %v1097_v32 = vadd.f32 %v1049_v14, %v2622_v45  ;;  %v1335_v17 = vsel %vm1271_vm13, %v1303_v51, 0.0 }
 0x289   :  { %v1932_v4 = vpop.eup %1931  ;;  %1396 = vadd.xlane.f32.xlu1 %v1335_v17  ;;  %1366 = vadd.xlane.f32.xlu0 %v1320_v24  ;;  %v1336_v45 = vsel %vm1272_vm15, %v1304_v62, 0.0 }
 0x28a   :  { %v1081_v1 = vmul.f32 0.6931472, %v1932_v4  ;;  %v1289_v3 = vsub.f32 %v3122_v21, %v1097_v32 }
 0x28c   :  { %v1113_v5 = vadd.f32 %v1081_v1, %v2630_v22  ;;  %v1321_v30 = vsel %vm1257_vm14, %v1289_v3, 0.0 }
 0x28d   :  { %1368 = vadd.xlane.f32.xlu1 %v1321_v30  ;;  %1398 = vadd.xlane.f32.xlu0 %v1336_v45 }
 0x28e   :  { %v1305_v28 = vsub.f32 %v2449_v29, %v1113_v5 }
 0x290   :  { %v1337_v54 = vsel %vm1273_vm0, %v1305_v28, 0.0 }
 0x291   :  { %1400 = vadd.xlane.f32.xlu1 %v1337_v54 }
 0x292   :  { %1996 = shalt.err (!%p1993_p12)
}
 0x293   :  { %s1997_s9 = scalar_lea.hbm %s3008_s4, 4096 }
 0x294   :  { %p1998_p13 = scmp.ne.s32.totalorder %s3008_s4, %s1997_s9  ;;  %p2001_p0 = scmp.lt.u32.totalorder %s1997_s9, %s3008_s4 }
 0x296   :  { %p2003_p1 = pnand %p2001_p0, %p1998_p13 }
 0x298   :  { %2006 = shalt.err (!%p2003_p1)
}
 0x299   :  { %s2016_s14 = smov 128   ;;  %s2017_s15 = smov 8   ;;  %v1933_v18 = vld [vmem:[%s3007_s3] sm:$0xff]  ;;  %vm1498_vm2 = vcmask 7168   ;;  %v1935_v37 = vld [vmem:[%s3007_s3 + $0x8] sm:$0xff]  ;;  %v1936_v46 = vld [vmem:[%s3007_s3 + $0x10] sm:$0xff] }
 0x29a   :  { %1542 = dma.vmem_to_hbm [thread:$0]  %s1537_s6, 4096, %s3008_s4, [#allocation4], %s2016_s14, %s2016_s14, %s2017_s15   ;;  %vm1402_vm1 = vcmp.ge.s32.totalorder %v1933_v18, 0  ;;  %vm1403_vm4 = vcmp.ge.s32.totalorder %v1935_v37, 0  ;;  %vm1404_vm5 = vcmp.ge.s32.totalorder %v1936_v46, 0 }
 0x29b   :  { %v1934_v15 = vld [vmem:[%s3007_s3 + $0x80] sm:$0xff]  ;;  %v1937_v34 = vld [vmem:[%s3007_s3 + $0x88] sm:$0xff]  ;;  %v1938_v11 = vld [vmem:[%s3007_s3 + $0x18] sm:$0xff] }
 0x29c   :  { %vm1418_vm3 = vcmp.ge.s32.totalorder %v1934_v15, 0  ;;  %vm1419_vm6 = vcmp.ge.s32.totalorder %v1937_v34, 0  ;;  %vm1405_vm7 = vcmp.ge.s32.totalorder %v1938_v11, 0  ;;  %v1939_v0 = vld [vmem:[%s3007_s3 + $0x90] sm:$0xff]  ;;  %v1940_v8 = vld [vmem:[%s3007_s3 + $0x20] sm:$0xff]  ;;  %v1941_v25 = vld [vmem:[%s3007_s3 + $0x98] sm:$0xff] }
 0x29d   :  { %vm1420_vm8 = vcmp.ge.s32.totalorder %v1939_v0, 0  ;;  %vm1406_vm9 = vcmp.ge.s32.totalorder %v1940_v8, 0  ;;  %vm1421_vm10 = vcmp.ge.s32.totalorder %v1941_v25, 0  ;;  %v1942_v39 = vld [vmem:[%s3007_s3 + $0x28] sm:$0xff]  ;;  %v1943_v59 = vld [vmem:[%s3007_s3 + $0xa0] sm:$0xff]  ;;  %v1944_v52 = vld [vmem:[%s3007_s3 + $0x30] sm:$0xff] }
 0x29e   :  { %vm1407_vm11 = vcmp.ge.s32.totalorder %v1942_v39, 0  ;;  %vm1422_vm12 = vcmp.ge.s32.totalorder %v1943_v59, 0  ;;  %vm1408_vm13 = vcmp.ge.s32.totalorder %v1944_v52, 0  ;;  %v1945_v51 = vld [vmem:[%s3007_s3 + $0xa8] sm:$0xff]  ;;  %v1946_v24 = vld [vmem:[%s3007_s3 + $0x38] sm:$0xff]  ;;  %v1947_v4 = vld [vmem:[%s3007_s3 + $0xb0] sm:$0xff] }
 0x29f   :  { %vm1423_vm14 = vcmp.ge.s32.totalorder %v1945_v51, 0  ;;  %vm1409_vm15 = vcmp.ge.s32.totalorder %v1946_v24, 0  ;;  %vm1424_vm0 = vcmp.ge.s32.totalorder %v1947_v4, 0  ;;  %v1948_v45 = vld [vmem:[%s3007_s3 + $0x40] sm:$0xff]  ;;  %v1949_v30 = vld [vmem:[%s3007_s3 + $0xb8] sm:$0xff]  ;;  %v1950_v15 = vld [vmem:[%s3007_s3 + $0x48] sm:$0xff] }
 0x2a0   :  { %v1952_v46 = vld [vmem:[%s3007_s3 + $0x50] sm:$0xff]  ;;  %v1953_v34 = vld [vmem:[%s3007_s3 + $0xc8] sm:$0xff]  ;;  %v1954_v11 = vld [vmem:[%s3007_s3 + $0x58] sm:$0xff] }
 0x2a1   :  { %v1955_v0 = vld [vmem:[%s3007_s3 + $0xd0] sm:$0xff]  ;;  %v1956_v8 = vld [vmem:[%s3007_s3 + $0x60] sm:$0xff]  ;;  %v1957_v25 = vld [vmem:[%s3007_s3 + $0xd8] sm:$0xff] }
 0x2a2   :  { %v1958_v39 = vld [vmem:[%s3007_s3 + $0x68] sm:$0xff]  ;;  %v1959_v59 = vld [vmem:[%s3007_s3 + $0xe0] sm:$0xff]  ;;  %v1960_v52 = vld [vmem:[%s3007_s3 + $0x70] sm:$0xff] }
 0x2a3   :  { %v1961_v51 = vld [vmem:[%s3007_s3 + $0xe8] sm:$0xff]  ;;  %v1962_v24 = vld [vmem:[%s3007_s3 + $0x78] sm:$0xff] }
 0x2d9   :  { %v1339_v29 = vpop.xlane.xlu1 %1338 }
 0x2da   :  { %v1434_v22 = vsub.f32 0.0, %v1339_v29 }
 0x2dc   :  { %v1466_v53 = vsel %vm1402_vm1, %v1434_v22, 0.0  ;;  %vm1410_vm1 = vcmp.ge.s32.totalorder %v1948_v45, 0  ;;  %v3125_v45 = vld [vmem:[#allocation52_spill] sm:$0xff] }
 0x2dd   :  { %1499 = vst.msk [vmem:[%s3009_s5] sm:$0xff] %vm1498_vm2, %v1466_v53  ;;  %v1371_v47 = vpop.xlane.xlu0 %1370 }
 0x2de   :  { %v1450_v35 = vsub.f32 0.0, %v1371_v47  ;;  %v1951_v47 = vld [vmem:[%s3007_s3 + $0xc0] sm:$0xff] }
 0x2e0   :  { %v1482_v26 = vsel %vm1418_vm3, %v1450_v35, 0.0  ;;  %vm1425_vm3 = vcmp.ge.s32.totalorder %v1949_v30, 0 }
 0x2e1   :  { %1515 = vst.msk [vmem:[%s3009_s5 + $0x80] sm:$0xff] %vm1498_vm2, %v1482_v26 }
 0x2e2   :  { %v1341_v6 = vpop.xlane.xlu0 %1340 }
 0x2e3   :  { %v1435_v57 = vsub.f32 0.0, %v1341_v6 }
 0x2e5   :  { %v1467_v12 = vsel %vm1403_vm4, %v1435_v57, 0.0  ;;  %vm1411_vm4 = vcmp.ge.s32.totalorder %v1950_v15, 0 }
 0x2e6   :  { %1500 = vst.msk [vmem:[%s3009_s5 + $0x8] sm:$0xff] %vm1498_vm2, %v1467_v12  ;;  %v1373_v43 = vpop.xlane.xlu1 %1372  ;;  %v1343_v42 = vpop.xlane.xlu0 %1342 }
 0x2e7   :  { %v1451_v41 = vsub.f32 0.0, %v1373_v43  ;;  %v1436_v55 = vsub.f32 0.0, %v1343_v42 }
 0x2e9   :  { %v1483_v31 = vsel %vm1419_vm6, %v1451_v41, 0.0  ;;  %v1468_v48 = vsel %vm1404_vm5, %v1436_v55, 0.0  ;;  %vm1426_vm5 = vcmp.ge.s32.totalorder %v1951_v47, 0  ;;  %vm1412_vm6 = vcmp.ge.s32.totalorder %v1952_v46, 0 }
 0x2ea   :  { %1516 = vst.msk [vmem:[%s3009_s5 + $0x88] sm:$0xff] %vm1498_vm2, %v1483_v31  ;;  %1501 = vst.msk [vmem:[%s3009_s5 + $0x10] sm:$0xff] %vm1498_vm2, %v1468_v48  ;;  %v1345_v60 = vpop.xlane.xlu1 %1344  ;;  %v1375_v9 = vpop.xlane.xlu0 %1374 }
 0x2eb   :  { %v1437_v49 = vsub.f32 0.0, %v1345_v60  ;;  %v1452_v2 = vsub.f32 0.0, %v1375_v9 }
 0x2ed   :  { %v1469_v33 = vsel %vm1405_vm7, %v1437_v49, 0.0  ;;  %v1484_v38 = vsel %vm1420_vm8, %v1452_v2, 0.0  ;;  %vm1427_vm7 = vcmp.ge.s32.totalorder %v1953_v34, 0  ;;  %vm1413_vm8 = vcmp.ge.s32.totalorder %v1954_v11, 0 }
 0x2ee   :  { %1502 = vst.msk [vmem:[%s3009_s5 + $0x18] sm:$0xff] %vm1498_vm2, %v1469_v33  ;;  %1517 = vst.msk [vmem:[%s3009_s5 + $0x90] sm:$0xff] %vm1498_vm2, %v1484_v38  ;;  %v1377_v58 = vpop.xlane.xlu1 %1376  ;;  %v1347_v63 = vpop.xlane.xlu0 %1346 }
 0x2ef   :  { %v1453_v61 = vsub.f32 0.0, %v1377_v58  ;;  %v1438_v50 = vsub.f32 0.0, %v1347_v63 }
 0x2f1   :  { %v1485_v27 = vsel %vm1421_vm10, %v1453_v61, 0.0  ;;  %v1470_v44 = vsel %vm1406_vm9, %v1438_v50, 0.0  ;;  %vm1428_vm9 = vcmp.ge.s32.totalorder %v1955_v0, 0  ;;  %vm1414_vm10 = vcmp.ge.s32.totalorder %v1956_v8, 0 }
 0x2f2   :  { %1518 = vst.msk [vmem:[%s3009_s5 + $0x98] sm:$0xff] %vm1498_vm2, %v1485_v27  ;;  %1503 = vst.msk [vmem:[%s3009_s5 + $0x20] sm:$0xff] %vm1498_vm2, %v1470_v44  ;;  %v1349_v10 = vpop.xlane.xlu1 %1348  ;;  %v1379_v36 = vpop.xlane.xlu0 %1378 }
 0x2f3   :  { %v1439_v13 = vsub.f32 0.0, %v1349_v10  ;;  %v1454_v40 = vsub.f32 0.0, %v1379_v36 }
 0x2f5   :  { %v1471_v56 = vsel %vm1407_vm11, %v1439_v13, 0.0  ;;  %v1486_v14 = vsel %vm1422_vm12, %v1454_v40, 0.0  ;;  %vm1429_vm11 = vcmp.ge.s32.totalorder %v1957_v25, 0  ;;  %vm1415_vm12 = vcmp.ge.s32.totalorder %v1958_v39, 0 }
 0x2f6   :  { %1504 = vst.msk [vmem:[%s3009_s5 + $0x28] sm:$0xff] %vm1498_vm2, %v1471_v56  ;;  %1519 = vst.msk [vmem:[%s3009_s5 + $0xa0] sm:$0xff] %vm1498_vm2, %v1486_v14  ;;  %v1381_v20 = vpop.xlane.xlu1 %1380  ;;  %v1351_v19 = vpop.xlane.xlu0 %1350 }
 0x2f7   :  { %v1455_v32 = vsub.f32 0.0, %v1381_v20  ;;  %v1440_v16 = vsub.f32 0.0, %v1351_v19 }
 0x2f9   :  { %v1487_v62 = vsel %vm1423_vm14, %v1455_v32, 0.0  ;;  %v1472_v17 = vsel %vm1408_vm13, %v1440_v16, 0.0  ;;  %vm1430_vm13 = vcmp.ge.s32.totalorder %v1959_v59, 0  ;;  %vm1416_vm14 = vcmp.ge.s32.totalorder %v1960_v52, 0 }
 0x2fa   :  { %1520 = vst.msk [vmem:[%s3009_s5 + $0xa8] sm:$0xff] %vm1498_vm2, %v1487_v62  ;;  %1505 = vst.msk [vmem:[%s3009_s5 + $0x30] sm:$0xff] %vm1498_vm2, %v1472_v17  ;;  %v1353_v1 = vpop.xlane.xlu1 %1352  ;;  %v1383_v21 = vpop.xlane.xlu0 %1382 }
 0x2fb   :  { %v1441_v3 = vsub.f32 0.0, %v1353_v1  ;;  %v1456_v23 = vsub.f32 0.0, %v1383_v21  ;;  %v3124_v1 = vld [vmem:[#allocation53_spill] sm:$0xff] }
 0x2fd   :  { %v1473_v5 = vsel %vm1409_vm15, %v1441_v3, 0.0  ;;  %v1488_v7 = vsel %vm1424_vm0, %v1456_v23, 0.0  ;;  %vm1431_vm15 = vcmp.ge.s32.totalorder %v1961_v51, 0  ;;  %vm1417_vm0 = vcmp.ge.s32.totalorder %v1962_v24, 0 }
 0x2fe   :  { %1506 = vst.msk [vmem:[%s3009_s5 + $0x38] sm:$0xff] %vm1498_vm2, %v1473_v5  ;;  %1521 = vst.msk [vmem:[%s3009_s5 + $0xb0] sm:$0xff] %vm1498_vm2, %v1488_v7  ;;  %v1385_v28 = vpop.xlane.xlu1 %1384  ;;  %v1355_v54 = vpop.xlane.xlu0 %1354 }
 0x2ff   :  { %v1457_v18 = vsub.f32 0.0, %v1385_v28  ;;  %v1442_v29 = vsub.f32 0.0, %v1355_v54 }
 0x301   :  { %v1489_v22 = vsel %vm1425_vm3, %v1457_v18, 0.0  ;;  %v1474_v53 = vsel %vm1410_vm1, %v1442_v29, 0.0  ;;  %vm1432_vm1 = vcmp.ge.s32.totalorder %v3124_v1, 0  ;;  %vm1433_vm3 = vcmp.ge.s32.totalorder %v3125_v45, 0 }
 0x302   :  { %1522 = vst.msk [vmem:[%s3009_s5 + $0xb8] sm:$0xff] %vm1498_vm2, %v1489_v22  ;;  %1507 = vst.msk [vmem:[%s3009_s5 + $0x40] sm:$0xff] %vm1498_vm2, %v1474_v53  ;;  %v1357_v35 = vpop.xlane.xlu1 %1356  ;;  %v1387_v26 = vpop.xlane.xlu0 %1386 }
 0x303   :  { %v1443_v37 = vsub.f32 0.0, %v1357_v35  ;;  %v1458_v6 = vsub.f32 0.0, %v1387_v26 }
 0x305   :  { %v1475_v57 = vsel %vm1411_vm4, %v1443_v37, 0.0  ;;  %v1490_v12 = vsel %vm1426_vm5, %v1458_v6, 0.0 }
 0x306   :  { %1508 = vst.msk [vmem:[%s3009_s5 + $0x48] sm:$0xff] %vm1498_vm2, %v1475_v57  ;;  %1523 = vst.msk [vmem:[%s3009_s5 + $0xc0] sm:$0xff] %vm1498_vm2, %v1490_v12  ;;  %v1389_v43 = vpop.xlane.xlu1 %1388  ;;  %v1359_v42 = vpop.xlane.xlu0 %1358 }
 0x307   :  { %v1459_v41 = vsub.f32 0.0, %v1389_v43  ;;  %v1444_v55 = vsub.f32 0.0, %v1359_v42 }
 0x309   :  { %v1491_v31 = vsel %vm1427_vm7, %v1459_v41, 0.0  ;;  %v1476_v48 = vsel %vm1412_vm6, %v1444_v55, 0.0 }
 0x30a   :  { %1524 = vst.msk [vmem:[%s3009_s5 + $0xc8] sm:$0xff] %vm1498_vm2, %v1491_v31  ;;  %1509 = vst.msk [vmem:[%s3009_s5 + $0x50] sm:$0xff] %vm1498_vm2, %v1476_v48  ;;  %v1361_v60 = vpop.xlane.xlu1 %1360  ;;  %v1391_v9 = vpop.xlane.xlu0 %1390 }
 0x30b   :  { %v1445_v49 = vsub.f32 0.0, %v1361_v60  ;;  %v1460_v2 = vsub.f32 0.0, %v1391_v9 }
 0x30d   :  { %v1477_v33 = vsel %vm1413_vm8, %v1445_v49, 0.0  ;;  %v1492_v38 = vsel %vm1428_vm9, %v1460_v2, 0.0 }
 0x30e   :  { %1510 = vst.msk [vmem:[%s3009_s5 + $0x58] sm:$0xff] %vm1498_vm2, %v1477_v33  ;;  %1525 = vst.msk [vmem:[%s3009_s5 + $0xd0] sm:$0xff] %vm1498_vm2, %v1492_v38  ;;  %v1393_v58 = vpop.xlane.xlu1 %1392  ;;  %v1363_v63 = vpop.xlane.xlu0 %1362 }
 0x30f   :  { %v1461_v61 = vsub.f32 0.0, %v1393_v58  ;;  %v1446_v50 = vsub.f32 0.0, %v1363_v63 }
 0x311   :  { %v1493_v27 = vsel %vm1429_vm11, %v1461_v61, 0.0  ;;  %v1478_v44 = vsel %vm1414_vm10, %v1446_v50, 0.0 }
 0x312   :  { %1526 = vst.msk [vmem:[%s3009_s5 + $0xd8] sm:$0xff] %vm1498_vm2, %v1493_v27  ;;  %1511 = vst.msk [vmem:[%s3009_s5 + $0x60] sm:$0xff] %vm1498_vm2, %v1478_v44  ;;  %v1365_v10 = vpop.xlane.xlu1 %1364  ;;  %v1395_v36 = vpop.xlane.xlu0 %1394 }
 0x313   :  { %v1447_v13 = vsub.f32 0.0, %v1365_v10  ;;  %v1462_v40 = vsub.f32 0.0, %v1395_v36 }
 0x315   :  { %v1479_v56 = vsel %vm1415_vm12, %v1447_v13, 0.0  ;;  %v1494_v14 = vsel %vm1430_vm13, %v1462_v40, 0.0 }
 0x316   :  { %1512 = vst.msk [vmem:[%s3009_s5 + $0x68] sm:$0xff] %vm1498_vm2, %v1479_v56  ;;  %1527 = vst.msk [vmem:[%s3009_s5 + $0xe0] sm:$0xff] %vm1498_vm2, %v1494_v14  ;;  %v1397_v20 = vpop.xlane.xlu1 %1396  ;;  %v1367_v19 = vpop.xlane.xlu0 %1366 }
 0x317   :  { %v1463_v32 = vsub.f32 0.0, %v1397_v20  ;;  %v1448_v16 = vsub.f32 0.0, %v1367_v19 }
 0x319   :  { %v1495_v62 = vsel %vm1431_vm15, %v1463_v32, 0.0  ;;  %v1480_v17 = vsel %vm1416_vm14, %v1448_v16, 0.0 }
 0x31a   :  { %1528 = vst.msk [vmem:[%s3009_s5 + $0xe8] sm:$0xff] %vm1498_vm2, %v1495_v62  ;;  %1513 = vst.msk [vmem:[%s3009_s5 + $0x70] sm:$0xff] %vm1498_vm2, %v1480_v17  ;;  %v1369_v4 = vpop.xlane.xlu1 %1368  ;;  %v1399_v21 = vpop.xlane.xlu0 %1398 }
 0x31b   :  { %v1449_v3 = vsub.f32 0.0, %v1369_v4  ;;  %v1464_v23 = vsub.f32 0.0, %v1399_v21 }
 0x31d   :  { %v1481_v5 = vsel %vm1417_vm0, %v1449_v3, 0.0  ;;  %v1496_v7 = vsel %vm1432_vm1, %v1464_v23, 0.0 }
 0x31e   :  { %1514 = vst.msk [vmem:[%s3009_s5 + $0x78] sm:$0xff] %vm1498_vm2, %v1481_v5  ;;  %1529 = vst.msk [vmem:[%s3009_s5 + $0xf0] sm:$0xff] %vm1498_vm2, %v1496_v7  ;;  %v1401_v30 = vpop.xlane.xlu1 %1400 }
 0x31f   :  { %v1465_v28 = vsub.f32 0.0, %v1401_v30 }
 0x321   :  { %v1497_v54 = vsel %vm1433_vm3, %v1465_v28, 0.0 }
 0x322   :  { %1530 = vst.msk [vmem:[%s3009_s5 + $0xf8] sm:$0xff] %vm1498_vm2, %v1497_v54 }
 0x323   :  { %2009 = dma.done.wait [#allocation4], 4096  }
 0x324   :  { %2010 = vsyncadd [#allocation4], 4294963200 }
 0x325   :  { %1550 = vsyncpa [#allocation3], 1 }
 0x326   :  { %1551 = vsyncpa [#allocation4], 1 }

</bundles_post_ra>
